<compile_context>
chip_gen: v7x
topology: tpu7x:2x2x1
jax: 0.10.0
libtpu: 0.0.40
codegen_flags: <defaults>
</compile_context>

<pallas_src>
import functools

import jax
import jax.numpy as jnp
from jax.experimental import pallas as pl
from jax.experimental.pallas import tpu as pltpu


# -----------------------------------------------------------------------------
# Fused transposed-GEMM Pallas kernel:
#   O (Cout, M) = act( W (Cout, K) @ A (K, M) + b (Cout, 1) [+ R (Cout, M)] )
# -----------------------------------------------------------------------------

def _gemm_t_kernel(*refs, act, has_res):
    if has_res:
        w_ref, a_ref, b_ref, r_ref, o_ref = refs
    else:
        w_ref, a_ref, b_ref, o_ref = refs
        r_ref = None
    acc = jnp.dot(w_ref[...], a_ref[...], preferred_element_type=jnp.float32)
    acc = acc + b_ref[...]                                  # (Cout,1) lane broadcast
    if has_res:
        acc = acc + r_ref[...].astype(jnp.float32)
    if act == "relu":
        acc = jnp.maximum(acc, 0.0)
    elif act == "elu":
        z = jnp.minimum(acc, 0.0)                           # exp arg <= 0: no overflow
        acc = jnp.where(acc > 0.0, acc, jnp.exp(z) - 1.0)
    o_ref[...] = acc.astype(o_ref.dtype)


def _round_up(x, m):
    return ((x + m - 1) // m) * m


def _pad_to(x, shape):
    pads = [(0, t - s) for s, t in zip(x.shape, shape)]
    if all(p == (0, 0) for p in pads):
        return x
    return jnp.pad(x, pads)


_TM = 256          # lane-axis (spatial) tile: >= 2 parallel blocks at M = 512 (v7x)
_MAX_K = 2048      # single-shot K limit; every GEMM in this net has K <= 128


def fused_matmul_t(wt, a, b, residual, act, out_dtype=jnp.bfloat16):
    """act(wt @ a + b [+ residual]).
    wt:(Cout,K), a:(K,M) bf16, b:(Cout,), residual:(Cout,M) bf16 or None."""
    nr, K = wt.shape
    M = a.shape[1]
    assert K <= _MAX_K  # TODO(synk): add a K-tiled accumulator path for large Cin

    nrp = _round_up(nr, 16)                     # bf16 sublane packing
    kp = _round_up(K, 16)
    tm = min(_round_up(M, 128), _TM)
    mp = _round_up(M, tm)

    wt_p = _pad_to(wt.astype(jnp.bfloat16), (nrp, kp))
    a_p = _pad_to(a.astype(jnp.bfloat16), (kp, mp))
    b_p = _pad_to(b.astype(jnp.float32).reshape(nr, 1), (nrp, 1))

    inputs = [wt_p, a_p, b_p]
    in_specs = [
        pl.BlockSpec((nrp, kp), lambda i: (0, 0)),     # weights stay resident
        pl.BlockSpec((kp, tm), lambda i: (0, i)),
        pl.BlockSpec((nrp, 1), lambda i: (0, 0)),
    ]
    has_res = residual is not None
    if has_res:
        inputs.append(_pad_to(residual.astype(jnp.bfloat16), (nrp, mp)))
        in_specs.append(pl.BlockSpec((nrp, tm), lambda i: (0, i)))

    out = pl.pallas_call(
        functools.partial(_gemm_t_kernel, act=act, has_res=has_res),
        out_shape=jax.ShapeDtypeStruct((nrp, mp), out_dtype),
        grid_spec=pltpu.PrefetchScalarGridSpec(
            num_scalar_prefetch=0,
            grid=(mp // tm,),
            in_specs=in_specs,
            out_specs=pl.BlockSpec((nrp, tm), lambda i: (0, i)),
        ),
        compiler_params=pltpu.CompilerParams(
            dimension_semantics=("parallel",),
            vmem_limit_bytes=32 * 1024 * 1024,
        ),
    )(*inputs)

    if (nrp, mp) != (nr, M):
        out = out[:nr, :M]
    return out


# -----------------------------------------------------------------------------
# Conv lowering glue (channels-major im2col in plain JAX, fused GEMM in Pallas)
# -----------------------------------------------------------------------------

def _im2col_t(x, k, stride, pad):
    """x: (C, N, H, W) bf16 -> A^T (k*k*C, N*Ho*Wo), row order (kh, kw, c)."""
    C, N, H, W = x.shape
    if k == 1 and stride == 1 and pad == 0:
        return x.reshape(C, N * H * W), (N, H, W)
    xp = jnp.pad(x, ((0, 0), (0, 0), (pad, pad), (pad, pad)))
    Ho = (H + 2 * pad - k) // stride + 1
    Wo = (W + 2 * pad - k) // stride + 1
    taps = []
    for i in range(k):
        for j in range(k):
            taps.append(xp[:, :, i:i + stride * Ho:stride, j:j + stride * Wo:stride])
    a = jnp.concatenate(taps, axis=0)            # (k*k*C, N, Ho, Wo) in bf16
    # TODO(synk): extract patches in-kernel (halo tiles + pl.ds) to avoid the k*k
    # HBM blow-up of the patch buffer (it is at least bf16 now, half the old bytes).
    return a.reshape(k * k * C, N * Ho * Wo), (N, Ho, Wo)


def conv2d_t(x, w, b, *, k, stride, pad, act, bn=None, residual=None,
             out_dtype=jnp.bfloat16):
    """x: (Cin, N, H, W) bf16.  w: PyTorch Conv2d layout (Cout, Cin, kh, kw).
    Computes act(BN(conv(x) + b) [+ residual]); BN folded into w/b at trace time.
    Returns (Cout, N, Ho, Wo) bf16."""
    cout, cin = w.shape[0], w.shape[1]
    if bn is not None:
        s, t = bn
        w = w * s[:, None, None, None]
        b = b * s + t
    a, (n, ho, wo) = _im2col_t(x, k, stride, pad)
    wt = jnp.transpose(w, (0, 2, 3, 1)).reshape(cout, k * k * cin)
    r = None if residual is None else residual.reshape(cout, -1)
    out = fused_matmul_t(wt, a, b, r, act, out_dtype)
    return out.reshape(cout, n, ho, wo)


# -----------------------------------------------------------------------------
# res_UNet modules
# -----------------------------------------------------------------------------

_BN_EPS = 1e-5


def _default_bn(c):
    # Eval-mode BN with PyTorch defaults: gamma=1, beta=0, running_mean=0, running_var=1.
    scale = jnp.full((c,), (1.0 + _BN_EPS) ** -0.5, jnp.float32)
    shift = jnp.zeros((c,), jnp.float32)
    return scale, shift


def residual_block_apply(p, x, x_skip=None):
    """Residual_block: 1x1 align -> [3x3+BN+ELU, 3x3+BN] -> ReLU(align + dual).
    The decoder's torch.cat([x, x_skip], dim=1) is a cheap channel-axis concat in the
    (C, N, H, W) layout feeding a single 1x1-align GEMM."""
    if x_skip is not None:
        x = jnp.concatenate([x, x_skip], axis=0)
    xa = conv2d_t(x, p["align_w"], p["align_b"], k=1, stride=1, pad=0, act="none")
    h = conv2d_t(xa, p["c1_w"], p["c1_b"], k=3, stride=1, pad=1,
                 act="elu", bn=p["bn1"])
    # second 3x3: BN folded, residual add of xa and the final ReLU fused in epilogue
    return conv2d_t(h, p["c2_w"], p["c2_b"], k=3, stride=1, pad=1,
                    act="relu", bn=p["bn2"], residual=xa)


def trans_down_apply(p, x):
    """Conv2d(k=4, s=2, p=1) + BN + ELU, all in one fused GEMM."""
    return conv2d_t(x, p["w"], p["b"], k=4, stride=2, pad=1, act="elu", bn=p["bn"])


def trans_up_apply(p, x):
    """ConvTranspose2d(k=4, s=2, p=1) + BN + ELU with all four output parities in ONE
    fused GEMM: the 2x2 polyphase sub-kernels are embedded as zero-padded 3x3 taps
    and stacked along the output-channel axis (row order (a, c, cout)), applied to a
    single k=3/pad=1 im2col of the un-dilated input, then de-interleaved by parity.
    Bias/BN/ELU per parity is exact since parities write disjoint output pixels."""
    w = p["w"]                                               # (Cin, Cout, 4, 4)
    cin, cout = w.shape[0], w.shape[1]
    _, n, h, wd = x.shape
    w_eq = jnp.transpose(w, (1, 0, 2, 3))[:, :, ::-1, ::-1]  # forward-conv weight
    blocks = []
    for a in (0, 1):              # output row parity
        for c in (0, 1):          # output col parity
            sub = w_eq[:, :, a::2, c::2]                     # (Cout, Cin, 2, 2)
            k3 = jnp.zeros((cout, cin, 3, 3), w.dtype)
            blocks.append(k3.at[:, :, a:a + 2, c:c + 2].set(sub))
    w_merged = jnp.concatenate(blocks, axis=0)               # (4*Cout, Cin, 3, 3)
    b_merged = jnp.tile(p["b"], 4)
    bn_merged = (jnp.tile(p["bn"][0], 4), jnp.tile(p["bn"][1], 4))
    y = conv2d_t(x, w_merged, b_merged, k=3, stride=1, pad=1,
                 act="elu", bn=bn_merged)                    # (4*Cout, n, h, wd)
    y = y.reshape(2, 2, cout, n, h, wd)                      # (a, c, co, n, y, x)
    y = jnp.transpose(y, (2, 3, 4, 0, 5, 1))                 # (co, n, y, a, x, c)
    return y.reshape(cout, n, 2 * h, 2 * wd)


# -----------------------------------------------------------------------------
# Parameter construction (deterministic, synthetic)
# -----------------------------------------------------------------------------

class _ParamGen:
    def __init__(self, key):
        self.key = key

    def next(self, shape, scale=0.2):
        self.key, sub = jax.random.split(self.key)
        return jax.random.normal(sub, shape, jnp.float32) * scale


def _make_res_params(pg, cin, cout):
    return {
        "align_w": pg.next((cout, cin, 1, 1)), "align_b": pg.next((cout,)),
        "c1_w": pg.next((cout, cout, 3, 3)), "c1_b": pg.next((cout,)),
        "bn1": _default_bn(cout),
        "c2_w": pg.next((cout, cout, 3, 3)), "c2_b": pg.next((cout,)),
        "bn2": _default_bn(cout),
    }


def _make_td_params(pg, c):
    return {"w": pg.next((c, c, 4, 4)), "b": pg.next((c,)), "bn": _default_bn(c)}


def _make_tu_params(pg, c):
    # PyTorch ConvTranspose2d weight layout: (Cin, Cout, kH, kW)
    return {"w": pg.next((c, c, 4, 4)), "b": pg.next((c,)), "bn": _default_bn(c)}


def build_params(key, nch_enc):
    pg = _ParamGen(key)
    nch_aug = (1,) + tuple(nch_enc)
    n = len(nch_enc)
    enc, dec, td, tu = [], [], [], []
    for i in range(n):
        enc.append(_make_res_params(pg, nch_aug[i], nch_aug[i + 1]))
        td.append(_make_td_params(pg, nch_enc[i]))
        tu.append(_make_tu_params(pg, nch_enc[-1 - i]))
        if i == n - 1:
            dec.append(_make_res_params(pg, nch_aug[-1 - i] * 2, 1))
        else:
            dec.append(_make_res_params(pg, nch_aug[-1 - i] * 2, nch_aug[-2 - i]))
    return {"encoder": enc, "decoder": dec, "td": td, "tu": tu}


# -----------------------------------------------------------------------------
# Full forward pass (Pallas path)
# -----------------------------------------------------------------------------

def make_forward(params, nch_enc):
    n_levels = len(nch_enc)

    def forward(x_nchw):
        # NCHW (PyTorch) at the boundary; channels-major (C, N, H, W) bf16 inside so
        # the flat spatial axis lands on the 128-lane axis of every GEMM output.
        x = jnp.transpose(x_nchw, (1, 0, 2, 3)).astype(jnp.bfloat16)
        cats = []
        for i in range(n_levels):
            layer_opt = residual_block_apply(params["encoder"][i], x)
            x = trans_down_apply(params["td"][i], layer_opt)
            cats.append(layer_opt)
        layer_opt = x
        for i in range(n_levels):
            xu = trans_up_apply(params["tu"][i], layer_opt)
            # torch.cat([xu, skip], dim=1) handled inside the block (axis-0 concat)
            layer_opt = residual_block_apply(params["decoder"][i], xu,
                                             x_skip=cats[-1 - i])
        return jnp.transpose(layer_opt, (1, 0, 2, 3)).astype(jnp.float32)

    return jax.jit(forward)


# -----------------------------------------------------------------------------
# Plain-JAX f32 reference (for numerical validation of the Pallas path)
# -----------------------------------------------------------------------------

def _ref_conv(x, w, b, stride, pad):
    y = jax.lax.conv_general_dilated(
        x, w, window_strides=(stride, stride), padding=((pad, pad), (pad, pad)),
        dimension_numbers=("NCHW", "OIHW", "NCHW"))
    return y + b[None, :, None, None]


def _ref_bn(x, bn):
    s, t = bn
    return x * s[None, :, None, None] + t[None, :, None, None]


def _ref_elu(x):
    return jnp.where(x > 0.0, x, jnp.exp(jnp.minimum(x, 0.0)) - 1.0)


def _ref_res_block(p, x):
    xa = _ref_conv(x, p["align_w"], p["align_b"], 1, 0)
    h = _ref_elu(_ref_bn(_ref_conv(xa, p["c1_w"], p["c1_b"], 1, 1), p["bn1"]))
    h = _ref_bn(_ref_conv(h, p["c2_w"], p["c2_b"], 1, 1), p["bn2"])
    return jnp.maximum(xa + h, 0.0)


def _ref_trans_down(p, x):
    return _ref_elu(_ref_bn(_ref_conv(x, p["w"], p["b"], 2, 1), p["bn"]))


def _ref_trans_up(p, x):
    w_eq = jnp.transpose(p["w"], (1, 0, 2, 3))[:, :, ::-1, ::-1]
    y = jax.lax.conv_general_dilated(
        x, w_eq, window_strides=(1, 1), padding=((2, 2), (2, 2)),
        lhs_dilation=(2, 2), dimension_numbers=("NCHW", "OIHW", "NCHW"))
    y = y + p["b"][None, :, None, None]
    return _ref_elu(_ref_bn(y, p["bn"]))


def _ref_forward(params, x, nch_enc):
    cats = []
    for i in range(len(nch_enc)):
        layer_opt = _ref_res_block(params["encoder"][i], x)
        x = _ref_trans_down(params["td"][i], layer_opt)
        cats.append(layer_opt)
    layer_opt = x
    for i in range(len(nch_enc)):
        xu = _ref_trans_up(params["tu"][i], layer_opt)
        xcat = jnp.concatenate([xu, cats[-1 - i]], axis=1)
        layer_opt = _ref_res_block(params["decoder"][i], xcat)
    return layer_opt


# -----------------------------------------------------------------------------
# Main
# -----------------------------------------------------------------------------

if __name__ == "__main__":
    key = jax.random.PRNGKey(0)
    k_param, k_input = jax.random.split(key)

    nch_enc = (4, 8)                       # two encoder levels
    params = build_params(k_param, nch_enc)

    # input: batch=2, nch_in=1, 16x16 spatial (divisible by 2**len(nch_enc))
    x = jax.random.normal(k_input, (2, 1, 16, 16), jnp.float32)

    forward = make_forward(params, nch_enc)
    y = jax.block_until_ready(forward(x))

    assert y.shape == (2, 1, 16, 16)
    assert bool(jnp.all(jnp.isfinite(y)))
    assert bool(jnp.all(y >= 0.0))         # final Residual_block ends in ReLU

    # Numerical check vs. plain-JAX f32 reference (bf16 kernel path -> loose tol).
    y_ref = jax.block_until_ready(_ref_forward(params, x, nch_enc))
    max_err = float(jnp.max(jnp.abs(y - y_ref)))
    assert max_err < 0.1, f"mismatch vs reference: max abs err = {max_err}"

    print("KERNEL_OK")
</pallas_src>

<mosaic_0001>
module attributes {stable_mosaic.version = 11 : i64} {
  func.func @_gemm_t_kernel(%arg0: i32, %arg1: memref<16x16xbf16, #tpu.memory_space<vmem>>, %arg2: memref<16x256xbf16, #tpu.memory_space<vmem>>, %arg3: memref<16x1xf32, #tpu.memory_space<vmem>>, %arg4: memref<16x256xbf16, #tpu.memory_space<vmem>>) attributes {dimension_semantics = [#tpu.dimension_semantics<parallel>], iteration_bounds = array<i64: 2>, scalar_prefetch = 0 : i64, scratch_operands = 0 : i64, tpu.core_type = #tpu.core_type<tc>, window_params = [{pipeline_mode = #tpu.pipeline_mode<synchronous>, transform_indices = @transform_0, window_bounds = array<i64: 16, 16>}, {transform_indices = @transform_1, window_bounds = array<i64: 16, 256>}, {pipeline_mode = #tpu.pipeline_mode<synchronous>, transform_indices = @transform_2, window_bounds = array<i64: 16, 1>}, {transform_indices = @transform_3, window_bounds = array<i64: 16, 256>}]} {
    %c0 = arith.constant 0 : index
    %c0_0 = arith.constant 0 : index
    %0 = vector.load %arg1[%c0, %c0_0] : memref<16x16xbf16, #tpu.memory_space<vmem>>, vector<16x16xbf16>
    %c0_1 = arith.constant 0 : index
    %c0_2 = arith.constant 0 : index
    %1 = vector.load %arg2[%c0_1, %c0_2] : memref<16x256xbf16, #tpu.memory_space<vmem>>, vector<16x256xbf16>
    %cst = arith.constant dense<0.000000e+00> : vector<16x256xf32>
    %2 = tpu.matmul %0, %1, %cst {dimension_numbers = #tpu.dot_dimension_numbers<[1], [0], [0], [1], [0, 0, 1, 1], [], []>} : vector<16x16xbf16>, vector<16x256xbf16>, vector<16x256xf32> -> vector<16x256xf32>
    %c0_3 = arith.constant 0 : index
    %c0_4 = arith.constant 0 : index
    %3 = vector.load %arg3[%c0_3, %c0_4] : memref<16x1xf32, #tpu.memory_space<vmem>>, vector<16x1xf32>
    %4 = vector.broadcast %3 : vector<16x1xf32> to vector<16x256xf32>
    %5 = arith.addf %2, %4 : vector<16x256xf32>
    %6 = arith.truncf %5 : vector<16x256xf32> to vector<16x256xbf16>
    %c0_5 = arith.constant 0 : index
    %c0_6 = arith.constant 0 : index
    %7 = vector.load %arg4[%c0_5, %c0_6] : memref<16x256xbf16, #tpu.memory_space<vmem>>, vector<16x256xbf16>
    tpu.vector_store %arg4[%c0_5, %c0_6], %6 {strides = array<i32>} : memref<16x256xbf16, #tpu.memory_space<vmem>>, vector<16x256xbf16>,
    return
  }
  func.func @transform_0(%arg0: i32) -> (i32, i32) {
    %c0_i32 = arith.constant 0 : i32
    %c0_i32_0 = arith.constant 0 : i32
    %c0_i32_1 = arith.constant 0 : i32
    return %c0_i32, %c0_i32_0 : i32, i32
  }
  func.func @transform_1(%arg0: i32) -> (i32, i32) {
    %c0_i32 = arith.constant 0 : i32
    %c0_i32_0 = arith.constant 0 : i32
    return %c0_i32, %arg0 : i32, i32
  }
  func.func @transform_2(%arg0: i32) -> (i32, i32) {
    %c0_i32 = arith.constant 0 : i32
    %c0_i32_0 = arith.constant 0 : i32
    %c0_i32_1 = arith.constant 0 : i32
    return %c0_i32, %c0_i32_0 : i32, i32
  }
  func.func @transform_3(%arg0: i32) -> (i32, i32) {
    %c0_i32 = arith.constant 0 : i32
    %c0_i32_0 = arith.constant 0 : i32
    return %c0_i32, %arg0 : i32, i32
  }
}

module attributes {stable_mosaic.version = 11 : i64} {
  func.func @_gemm_t_kernel(%arg0: i32, %arg1: memref<16x48xbf16, #tpu.memory_space<vmem>>, %arg2: memref<48x256xbf16, #tpu.memory_space<vmem>>, %arg3: memref<16x1xf32, #tpu.memory_space<vmem>>, %arg4: memref<16x256xbf16, #tpu.memory_space<vmem>>) attributes {dimension_semantics = [#tpu.dimension_semantics<parallel>], iteration_bounds = array<i64: 2>, scalar_prefetch = 0 : i64, scratch_operands = 0 : i64, tpu.core_type = #tpu.core_type<tc>, window_params = [{pipeline_mode = #tpu.pipeline_mode<synchronous>, transform_indices = @transform_0, window_bounds = array<i64: 16, 48>}, {transform_indices = @transform_1, window_bounds = array<i64: 48, 256>}, {pipeline_mode = #tpu.pipeline_mode<synchronous>, transform_indices = @transform_2, window_bounds = array<i64: 16, 1>}, {transform_indices = @transform_3, window_bounds = array<i64: 16, 256>}]} {
    %c0 = arith.constant 0 : index
    %c0_0 = arith.constant 0 : index
    %0 = vector.load %arg1[%c0, %c0_0] : memref<16x48xbf16, #tpu.memory_space<vmem>>, vector<16x48xbf16>
    %c0_1 = arith.constant 0 : index
    %c0_2 = arith.constant 0 : index
    %1 = vector.load %arg2[%c0_1, %c0_2] : memref<48x256xbf16, #tpu.memory_space<vmem>>, vector<48x256xbf16>
    %cst = arith.constant dense<0.000000e+00> : vector<16x256xf32>
    %2 = tpu.matmul %0, %1, %cst {dimension_numbers = #tpu.dot_dimension_numbers<[1], [0], [0], [1], [0, 0, 1, 1], [], []>} : vector<16x48xbf16>, vector<48x256xbf16>, vector<16x256xf32> -> vector<16x256xf32>
    %c0_3 = arith.constant 0 : index
    %c0_4 = arith.constant 0 : index
    %3 = vector.load %arg3[%c0_3, %c0_4] : memref<16x1xf32, #tpu.memory_space<vmem>>, vector<16x1xf32>
    %4 = vector.broadcast %3 : vector<16x1xf32> to vector<16x256xf32>
    %5 = arith.addf %2, %4 : vector<16x256xf32>
    %cst_5 = arith.constant 0.000000e+00 : f32
    %6 = vector.broadcast %cst_5 : f32 to vector<16x256xf32>
    %7 = arith.minimumf %5, %6 : vector<16x256xf32>
    %cst_6 = arith.constant 0.000000e+00 : f32
    %8 = vector.broadcast %cst_6 : f32 to vector<16x256xf32>
    %9 = arith.cmpf ogt, %5, %8 : vector<16x256xf32>
    %10 = math.exp %7 : vector<16x256xf32>
    %cst_7 = arith.constant 1.000000e+00 : f32
    %11 = vector.broadcast %cst_7 : f32 to vector<16x256xf32>
    %12 = arith.subf %10, %11 : vector<16x256xf32>
    %13 = arith.select %9, %5, %12 : vector<16x256xi1>, vector<16x256xf32>
    %14 = arith.truncf %13 : vector<16x256xf32> to vector<16x256xbf16>
    %c0_8 = arith.constant 0 : index
    %c0_9 = arith.constant 0 : index
    %15 = vector.load %arg4[%c0_8, %c0_9] : memref<16x256xbf16, #tpu.memory_space<vmem>>, vector<16x256xbf16>
    tpu.vector_store %arg4[%c0_8, %c0_9], %14 {strides = array<i32>} : memref<16x256xbf16, #tpu.memory_space<vmem>>, vector<16x256xbf16>,
    return
  }
  func.func @transform_0(%arg0: i32) -> (i32, i32) {
    %c0_i32 = arith.constant 0 : i32
    %c0_i32_0 = arith.constant 0 : i32
    %c0_i32_1 = arith.constant 0 : i32
    return %c0_i32, %c0_i32_0 : i32, i32
  }
  func.func @transform_1(%arg0: i32) -> (i32, i32) {
    %c0_i32 = arith.constant 0 : i32
    %c0_i32_0 = arith.constant 0 : i32
    return %c0_i32, %arg0 : i32, i32
  }
  func.func @transform_2(%arg0: i32) -> (i32, i32) {
    %c0_i32 = arith.constant 0 : i32
    %c0_i32_0 = arith.constant 0 : i32
    %c0_i32_1 = arith.constant 0 : i32
    return %c0_i32, %c0_i32_0 : i32, i32
  }
  func.func @transform_3(%arg0: i32) -> (i32, i32) {
    %c0_i32 = arith.constant 0 : i32
    %c0_i32_0 = arith.constant 0 : i32
    return %c0_i32, %arg0 : i32, i32
  }
}

module attributes {stable_mosaic.version = 11 : i64} {
  func.func @_gemm_t_kernel(%arg0: i32, %arg1: memref<16x48xbf16, #tpu.memory_space<vmem>>, %arg2: memref<48x256xbf16, #tpu.memory_space<vmem>>, %arg3: memref<16x1xf32, #tpu.memory_space<vmem>>, %arg4: memref<16x256xbf16, #tpu.memory_space<vmem>>, %arg5: memref<16x256xbf16, #tpu.memory_space<vmem>>) attributes {dimension_semantics = [#tpu.dimension_semantics<parallel>], iteration_bounds = array<i64: 2>, scalar_prefetch = 0 : i64, scratch_operands = 0 : i64, tpu.core_type = #tpu.core_type<tc>, window_params = [{pipeline_mode = #tpu.pipeline_mode<synchronous>, transform_indices = @transform_0, window_bounds = array<i64: 16, 48>}, {transform_indices = @transform_1, window_bounds = array<i64: 48, 256>}, {pipeline_mode = #tpu.pipeline_mode<synchronous>, transform_indices = @transform_2, window_bounds = array<i64: 16, 1>}, {transform_indices = @transform_3, window_bounds = array<i64: 16, 256>}, {transform_indices = @transform_4, window_bounds = array<i64: 16, 256>}]} {
    %c0 = arith.constant 0 : index
    %c0_0 = arith.constant 0 : index
    %0 = vector.load %arg1[%c0, %c0_0] : memref<16x48xbf16, #tpu.memory_space<vmem>>, vector<16x48xbf16>
    %c0_1 = arith.constant 0 : index
    %c0_2 = arith.constant 0 : index
    %1 = vector.load %arg2[%c0_1, %c0_2] : memref<48x256xbf16, #tpu.memory_space<vmem>>, vector<48x256xbf16>
    %cst = arith.constant dense<0.000000e+00> : vector<16x256xf32>
    %2 = tpu.matmul %0, %1, %cst {dimension_numbers = #tpu.dot_dimension_numbers<[1], [0], [0], [1], [0, 0, 1, 1], [], []>} : vector<16x48xbf16>, vector<48x256xbf16>, vector<16x256xf32> -> vector<16x256xf32>
    %c0_3 = arith.constant 0 : index
    %c0_4 = arith.constant 0 : index
    %3 = vector.load %arg3[%c0_3, %c0_4] : memref<16x1xf32, #tpu.memory_space<vmem>>, vector<16x1xf32>
    %4 = vector.broadcast %3 : vector<16x1xf32> to vector<16x256xf32>
    %5 = arith.addf %2, %4 : vector<16x256xf32>
    %c0_5 = arith.constant 0 : index
    %c0_6 = arith.constant 0 : index
    %6 = vector.load %arg4[%c0_5, %c0_6] : memref<16x256xbf16, #tpu.memory_space<vmem>>, vector<16x256xbf16>
    %7 = arith.extf %6 : vector<16x256xbf16> to vector<16x256xf32>
    %8 = arith.addf %5, %7 : vector<16x256xf32>
    %cst_7 = arith.constant 0.000000e+00 : f32
    %9 = vector.broadcast %cst_7 : f32 to vector<16x256xf32>
    %10 = arith.maximumf %8, %9 : vector<16x256xf32>
    %11 = arith.truncf %10 : vector<16x256xf32> to vector<16x256xbf16>
    %c0_8 = arith.constant 0 : index
    %c0_9 = arith.constant 0 : index
    %12 = vector.load %arg5[%c0_8, %c0_9] : memref<16x256xbf16, #tpu.memory_space<vmem>>, vector<16x256xbf16>
    tpu.vector_store %arg5[%c0_8, %c0_9], %11 {strides = array<i32>} : memref<16x256xbf16, #tpu.memory_space<vmem>>, vector<16x256xbf16>,
    return
  }
  func.func @transform_0(%arg0: i32) -> (i32, i32) {
    %c0_i32 = arith.constant 0 : i32
    %c0_i32_0 = arith.constant 0 : i32
    %c0_i32_1 = arith.constant 0 : i32
    return %c0_i32, %c0_i32_0 : i32, i32
  }
  func.func @transform_1(%arg0: i32) -> (i32, i32) {
    %c0_i32 = arith.constant 0 : i32
    %c0_i32_0 = arith.constant 0 : i32
    return %c0_i32, %arg0 : i32, i32
  }
  func.func @transform_2(%arg0: i32) -> (i32, i32) {
    %c0_i32 = arith.constant 0 : i32
    %c0_i32_0 = arith.constant 0 : i32
    %c0_i32_1 = arith.constant 0 : i32
    return %c0_i32, %c0_i32_0 : i32, i32
  }
  func.func @transform_3(%arg0: i32) -> (i32, i32) {
    %c0_i32 = arith.constant 0 : i32
    %c0_i32_0 = arith.constant 0 : i32
    return %c0_i32, %arg0 : i32, i32
  }
  func.func @transform_4(%arg0: i32) -> (i32, i32) {
    %c0_i32 = arith.constant 0 : i32
    %c0_i32_0 = arith.constant 0 : i32
    return %c0_i32, %arg0 : i32, i32
  }
}

module attributes {stable_mosaic.version = 11 : i64} {
  func.func @_gemm_t_kernel(%arg0: i32, %arg1: memref<16x16xbf16, #tpu.memory_space<vmem>>, %arg2: memref<16x128xbf16, #tpu.memory_space<vmem>>, %arg3: memref<16x1xf32, #tpu.memory_space<vmem>>, %arg4: memref<16x128xbf16, #tpu.memory_space<vmem>>) attributes {dimension_semantics = [#tpu.dimension_semantics<parallel>], iteration_bounds = array<i64: 1>, scalar_prefetch = 0 : i64, scratch_operands = 0 : i64, tpu.core_type = #tpu.core_type<tc>, window_params = [{pipeline_mode = #tpu.pipeline_mode<synchronous>, transform_indices = @transform_0, window_bounds = array<i64: 16, 16>}, {transform_indices = @transform_1, window_bounds = array<i64: 16, 128>}, {pipeline_mode = #tpu.pipeline_mode<synchronous>, transform_indices = @transform_2, window_bounds = array<i64: 16, 1>}, {transform_indices = @transform_3, window_bounds = array<i64: 16, 128>}]} {
    %c0 = arith.constant 0 : index
    %c0_0 = arith.constant 0 : index
    %0 = vector.load %arg1[%c0, %c0_0] : memref<16x16xbf16, #tpu.memory_space<vmem>>, vector<16x16xbf16>
    %c0_1 = arith.constant 0 : index
    %c0_2 = arith.constant 0 : index
    %1 = vector.load %arg2[%c0_1, %c0_2] : memref<16x128xbf16, #tpu.memory_space<vmem>>, vector<16x128xbf16>
    %cst = arith.constant dense<0.000000e+00> : vector<16x128xf32>
    %2 = tpu.matmul %0, %1, %cst {dimension_numbers = #tpu.dot_dimension_numbers<[1], [0], [0], [1], [0, 0, 1, 1], [], []>} : vector<16x16xbf16>, vector<16x128xbf16>, vector<16x128xf32> -> vector<16x128xf32>
    %c0_3 = arith.constant 0 : index
    %c0_4 = arith.constant 0 : index
    %3 = vector.load %arg3[%c0_3, %c0_4] : memref<16x1xf32, #tpu.memory_space<vmem>>, vector<16x1xf32>
    %4 = vector.broadcast %3 : vector<16x1xf32> to vector<16x128xf32>
    %5 = arith.addf %2, %4 : vector<16x128xf32>
    %6 = arith.truncf %5 : vector<16x128xf32> to vector<16x128xbf16>
    %c0_5 = arith.constant 0 : index
    %c0_6 = arith.constant 0 : index
    %7 = vector.load %arg4[%c0_5, %c0_6] : memref<16x128xbf16, #tpu.memory_space<vmem>>, vector<16x128xbf16>
    tpu.vector_store %arg4[%c0_5, %c0_6], %6 {strides = array<i32>} : memref<16x128xbf16, #tpu.memory_space<vmem>>, vector<16x128xbf16>,
    return
  }
  func.func @transform_0(%arg0: i32) -> (i32, i32) {
    %c0_i32 = arith.constant 0 : i32
    %c0_i32_0 = arith.constant 0 : i32
    %c0_i32_1 = arith.constant 0 : i32
    return %c0_i32, %c0_i32_0 : i32, i32
  }
  func.func @transform_1(%arg0: i32) -> (i32, i32) {
    %c0_i32 = arith.constant 0 : i32
    %c0_i32_0 = arith.constant 0 : i32
    return %c0_i32, %arg0 : i32, i32
  }
  func.func @transform_2(%arg0: i32) -> (i32, i32) {
    %c0_i32 = arith.constant 0 : i32
    %c0_i32_0 = arith.constant 0 : i32
    %c0_i32_1 = arith.constant 0 : i32
    return %c0_i32, %c0_i32_0 : i32, i32
  }
  func.func @transform_3(%arg0: i32) -> (i32, i32) {
    %c0_i32 = arith.constant 0 : i32
    %c0_i32_0 = arith.constant 0 : i32
    return %c0_i32, %arg0 : i32, i32
  }
}

module attributes {stable_mosaic.version = 11 : i64} {
  func.func @_gemm_t_kernel(%arg0: i32, %arg1: memref<16x64xbf16, #tpu.memory_space<vmem>>, %arg2: memref<64x128xbf16, #tpu.memory_space<vmem>>, %arg3: memref<16x1xf32, #tpu.memory_space<vmem>>, %arg4: memref<16x128xbf16, #tpu.memory_space<vmem>>) attributes {dimension_semantics = [#tpu.dimension_semantics<parallel>], iteration_bounds = array<i64: 1>, scalar_prefetch = 0 : i64, scratch_operands = 0 : i64, tpu.core_type = #tpu.core_type<tc>, window_params = [{pipeline_mode = #tpu.pipeline_mode<synchronous>, transform_indices = @transform_0, window_bounds = array<i64: 16, 64>}, {transform_indices = @transform_1, window_bounds = array<i64: 64, 128>}, {pipeline_mode = #tpu.pipeline_mode<synchronous>, transform_indices = @transform_2, window_bounds = array<i64: 16, 1>}, {transform_indices = @transform_3, window_bounds = array<i64: 16, 128>}]} {
    %c0 = arith.constant 0 : index
    %c0_0 = arith.constant 0 : index
    %0 = vector.load %arg1[%c0, %c0_0] : memref<16x64xbf16, #tpu.memory_space<vmem>>, vector<16x64xbf16>
    %c0_1 = arith.constant 0 : index
    %c0_2 = arith.constant 0 : index
    %1 = vector.load %arg2[%c0_1, %c0_2] : memref<64x128xbf16, #tpu.memory_space<vmem>>, vector<64x128xbf16>
    %cst = arith.constant dense<0.000000e+00> : vector<16x128xf32>
    %2 = tpu.matmul %0, %1, %cst {dimension_numbers = #tpu.dot_dimension_numbers<[1], [0], [0], [1], [0, 0, 1, 1], [], []>} : vector<16x64xbf16>, vector<64x128xbf16>, vector<16x128xf32> -> vector<16x128xf32>
    %c0_3 = arith.constant 0 : index
    %c0_4 = arith.constant 0 : index
    %3 = vector.load %arg3[%c0_3, %c0_4] : memref<16x1xf32, #tpu.memory_space<vmem>>, vector<16x1xf32>
    %4 = vector.broadcast %3 : vector<16x1xf32> to vector<16x128xf32>
    %5 = arith.addf %2, %4 : vector<16x128xf32>
    %cst_5 = arith.constant 0.000000e+00 : f32
    %6 = vector.broadcast %cst_5 : f32 to vector<16x128xf32>
    %7 = arith.minimumf %5, %6 : vector<16x128xf32>
    %cst_6 = arith.constant 0.000000e+00 : f32
    %8 = vector.broadcast %cst_6 : f32 to vector<16x128xf32>
    %9 = arith.cmpf ogt, %5, %8 : vector<16x128xf32>
    %10 = math.exp %7 : vector<16x128xf32>
    %cst_7 = arith.constant 1.000000e+00 : f32
    %11 = vector.broadcast %cst_7 : f32 to vector<16x128xf32>
    %12 = arith.subf %10, %11 : vector<16x128xf32>
    %13 = arith.select %9, %5, %12 : vector<16x128xi1>, vector<16x128xf32>
    %14 = arith.truncf %13 : vector<16x128xf32> to vector<16x128xbf16>
    %c0_8 = arith.constant 0 : index
    %c0_9 = arith.constant 0 : index
    %15 = vector.load %arg4[%c0_8, %c0_9] : memref<16x128xbf16, #tpu.memory_space<vmem>>, vector<16x128xbf16>
    tpu.vector_store %arg4[%c0_8, %c0_9], %14 {strides = array<i32>} : memref<16x128xbf16, #tpu.memory_space<vmem>>, vector<16x128xbf16>,
    return
  }
  func.func @transform_0(%arg0: i32) -> (i32, i32) {
    %c0_i32 = arith.constant 0 : i32
    %c0_i32_0 = arith.constant 0 : i32
    %c0_i32_1 = arith.constant 0 : i32
    return %c0_i32, %c0_i32_0 : i32, i32
  }
  func.func @transform_1(%arg0: i32) -> (i32, i32) {
    %c0_i32 = arith.constant 0 : i32
    %c0_i32_0 = arith.constant 0 : i32
    return %c0_i32, %arg0 : i32, i32
  }
  func.func @transform_2(%arg0: i32) -> (i32, i32) {
    %c0_i32 = arith.constant 0 : i32
    %c0_i32_0 = arith.constant 0 : i32
    %c0_i32_1 = arith.constant 0 : i32
    return %c0_i32, %c0_i32_0 : i32, i32
  }
  func.func @transform_3(%arg0: i32) -> (i32, i32) {
    %c0_i32 = arith.constant 0 : i32
    %c0_i32_0 = arith.constant 0 : i32
    return %c0_i32, %arg0 : i32, i32
  }
}

module attributes {stable_mosaic.version = 11 : i64} {
  func.func @_gemm_t_kernel(%arg0: i32, %arg1: memref<16x80xbf16, #tpu.memory_space<vmem>>, %arg2: memref<80x128xbf16, #tpu.memory_space<vmem>>, %arg3: memref<16x1xf32, #tpu.memory_space<vmem>>, %arg4: memref<16x128xbf16, #tpu.memory_space<vmem>>) attributes {dimension_semantics = [#tpu.dimension_semantics<parallel>], iteration_bounds = array<i64: 1>, scalar_prefetch = 0 : i64, scratch_operands = 0 : i64, tpu.core_type = #tpu.core_type<tc>, window_params = [{pipeline_mode = #tpu.pipeline_mode<synchronous>, transform_indices = @transform_0, window_bounds = array<i64: 16, 80>}, {transform_indices = @transform_1, window_bounds = array<i64: 80, 128>}, {pipeline_mode = #tpu.pipeline_mode<synchronous>, transform_indices = @transform_2, window_bounds = array<i64: 16, 1>}, {transform_indices = @transform_3, window_bounds = array<i64: 16, 128>}]} {
    %c0 = arith.constant 0 : index
    %c0_0 = arith.constant 0 : index
    %0 = vector.load %arg1[%c0, %c0_0] : memref<16x80xbf16, #tpu.memory_space<vmem>>, vector<16x80xbf16>
    %c0_1 = arith.constant 0 : index
    %c0_2 = arith.constant 0 : index
    %1 = vector.load %arg2[%c0_1, %c0_2] : memref<80x128xbf16, #tpu.memory_space<vmem>>, vector<80x128xbf16>
    %cst = arith.constant dense<0.000000e+00> : vector<16x128xf32>
    %2 = tpu.matmul %0, %1, %cst {dimension_numbers = #tpu.dot_dimension_numbers<[1], [0], [0], [1], [0, 0, 1, 1], [], []>} : vector<16x80xbf16>, vector<80x128xbf16>, vector<16x128xf32> -> vector<16x128xf32>
    %c0_3 = arith.constant 0 : index
    %c0_4 = arith.constant 0 : index
    %3 = vector.load %arg3[%c0_3, %c0_4] : memref<16x1xf32, #tpu.memory_space<vmem>>, vector<16x1xf32>
    %4 = vector.broadcast %3 : vector<16x1xf32> to vector<16x128xf32>
    %5 = arith.addf %2, %4 : vector<16x128xf32>
    %cst_5 = arith.constant 0.000000e+00 : f32
    %6 = vector.broadcast %cst_5 : f32 to vector<16x128xf32>
    %7 = arith.minimumf %5, %6 : vector<16x128xf32>
    %cst_6 = arith.constant 0.000000e+00 : f32
    %8 = vector.broadcast %cst_6 : f32 to vector<16x128xf32>
    %9 = arith.cmpf ogt, %5, %8 : vector<16x128xf32>
    %10 = math.exp %7 : vector<16x128xf32>
    %cst_7 = arith.constant 1.000000e+00 : f32
    %11 = vector.broadcast %cst_7 : f32 to vector<16x128xf32>
    %12 = arith.subf %10, %11 : vector<16x128xf32>
    %13 = arith.select %9, %5, %12 : vector<16x128xi1>, vector<16x128xf32>
    %14 = arith.truncf %13 : vector<16x128xf32> to vector<16x128xbf16>
    %c0_8 = arith.constant 0 : index
    %c0_9 = arith.constant 0 : index
    %15 = vector.load %arg4[%c0_8, %c0_9] : memref<16x128xbf16, #tpu.memory_space<vmem>>, vector<16x128xbf16>
    tpu.vector_store %arg4[%c0_8, %c0_9], %14 {strides = array<i32>} : memref<16x128xbf16, #tpu.memory_space<vmem>>, vector<16x128xbf16>,
    return
  }
  func.func @transform_0(%arg0: i32) -> (i32, i32) {
    %c0_i32 = arith.constant 0 : i32
    %c0_i32_0 = arith.constant 0 : i32
    %c0_i32_1 = arith.constant 0 : i32
    return %c0_i32, %c0_i32_0 : i32, i32
  }
  func.func @transform_1(%arg0: i32) -> (i32, i32) {
    %c0_i32 = arith.constant 0 : i32
    %c0_i32_0 = arith.constant 0 : i32
    return %c0_i32, %arg0 : i32, i32
  }
  func.func @transform_2(%arg0: i32) -> (i32, i32) {
    %c0_i32 = arith.constant 0 : i32
    %c0_i32_0 = arith.constant 0 : i32
    %c0_i32_1 = arith.constant 0 : i32
    return %c0_i32, %c0_i32_0 : i32, i32
  }
  func.func @transform_3(%arg0: i32) -> (i32, i32) {
    %c0_i32 = arith.constant 0 : i32
    %c0_i32_0 = arith.constant 0 : i32
    return %c0_i32, %arg0 : i32, i32
  }
}

module attributes {stable_mosaic.version = 11 : i64} {
  func.func @_gemm_t_kernel(%arg0: i32, %arg1: memref<16x80xbf16, #tpu.memory_space<vmem>>, %arg2: memref<80x128xbf16, #tpu.memory_space<vmem>>, %arg3: memref<16x1xf32, #tpu.memory_space<vmem>>, %arg4: memref<16x128xbf16, #tpu.memory_space<vmem>>, %arg5: memref<16x128xbf16, #tpu.memory_space<vmem>>) attributes {dimension_semantics = [#tpu.dimension_semantics<parallel>], iteration_bounds = array<i64: 1>, scalar_prefetch = 0 : i64, scratch_operands = 0 : i64, tpu.core_type = #tpu.core_type<tc>, window_params = [{pipeline_mode = #tpu.pipeline_mode<synchronous>, transform_indices = @transform_0, window_bounds = array<i64: 16, 80>}, {transform_indices = @transform_1, window_bounds = array<i64: 80, 128>}, {pipeline_mode = #tpu.pipeline_mode<synchronous>, transform_indices = @transform_2, window_bounds = array<i64: 16, 1>}, {transform_indices = @transform_3, window_bounds = array<i64: 16, 128>}, {transform_indices = @transform_4, window_bounds = array<i64: 16, 128>}]} {
    %c0 = arith.constant 0 : index
    %c0_0 = arith.constant 0 : index
    %0 = vector.load %arg1[%c0, %c0_0] : memref<16x80xbf16, #tpu.memory_space<vmem>>, vector<16x80xbf16>
    %c0_1 = arith.constant 0 : index
    %c0_2 = arith.constant 0 : index
    %1 = vector.load %arg2[%c0_1, %c0_2] : memref<80x128xbf16, #tpu.memory_space<vmem>>, vector<80x128xbf16>
    %cst = arith.constant dense<0.000000e+00> : vector<16x128xf32>
    %2 = tpu.matmul %0, %1, %cst {dimension_numbers = #tpu.dot_dimension_numbers<[1], [0], [0], [1], [0, 0, 1, 1], [], []>} : vector<16x80xbf16>, vector<80x128xbf16>, vector<16x128xf32> -> vector<16x128xf32>
    %c0_3 = arith.constant 0 : index
    %c0_4 = arith.constant 0 : index
    %3 = vector.load %arg3[%c0_3, %c0_4] : memref<16x1xf32, #tpu.memory_space<vmem>>, vector<16x1xf32>
    %4 = vector.broadcast %3 : vector<16x1xf32> to vector<16x128xf32>
    %5 = arith.addf %2, %4 : vector<16x128xf32>
    %c0_5 = arith.constant 0 : index
    %c0_6 = arith.constant 0 : index
    %6 = vector.load %arg4[%c0_5, %c0_6] : memref<16x128xbf16, #tpu.memory_space<vmem>>, vector<16x128xbf16>
    %7 = arith.extf %6 : vector<16x128xbf16> to vector<16x128xf32>
    %8 = arith.addf %5, %7 : vector<16x128xf32>
    %cst_7 = arith.constant 0.000000e+00 : f32
    %9 = vector.broadcast %cst_7 : f32 to vector<16x128xf32>
    %10 = arith.maximumf %8, %9 : vector<16x128xf32>
    %11 = arith.truncf %10 : vector<16x128xf32> to vector<16x128xbf16>
    %c0_8 = arith.constant 0 : index
    %c0_9 = arith.constant 0 : index
    %12 = vector.load %arg5[%c0_8, %c0_9] : memref<16x128xbf16, #tpu.memory_space<vmem>>, vector<16x128xbf16>
    tpu.vector_store %arg5[%c0_8, %c0_9], %11 {strides = array<i32>} : memref<16x128xbf16, #tpu.memory_space<vmem>>, vector<16x128xbf16>,
    return
  }
  func.func @transform_0(%arg0: i32) -> (i32, i32) {
    %c0_i32 = arith.constant 0 : i32
    %c0_i32_0 = arith.constant 0 : i32
    %c0_i32_1 = arith.constant 0 : i32
    return %c0_i32, %c0_i32_0 : i32, i32
  }
  func.func @transform_1(%arg0: i32) -> (i32, i32) {
    %c0_i32 = arith.constant 0 : i32
    %c0_i32_0 = arith.constant 0 : i32
    return %c0_i32, %arg0 : i32, i32
  }
  func.func @transform_2(%arg0: i32) -> (i32, i32) {
    %c0_i32 = arith.constant 0 : i32
    %c0_i32_0 = arith.constant 0 : i32
    %c0_i32_1 = arith.constant 0 : i32
    return %c0_i32, %c0_i32_0 : i32, i32
  }
  func.func @transform_3(%arg0: i32) -> (i32, i32) {
    %c0_i32 = arith.constant 0 : i32
    %c0_i32_0 = arith.constant 0 : i32
    return %c0_i32, %arg0 : i32, i32
  }
  func.func @transform_4(%arg0: i32) -> (i32, i32) {
    %c0_i32 = arith.constant 0 : i32
    %c0_i32_0 = arith.constant 0 : i32
    return %c0_i32, %arg0 : i32, i32
  }
}

module attributes {stable_mosaic.version = 11 : i64} {
  func.func @_gemm_t_kernel(%arg0: i32, %arg1: memref<16x128xbf16, #tpu.memory_space<vmem>>, %arg2: memref<128x128xbf16, #tpu.memory_space<vmem>>, %arg3: memref<16x1xf32, #tpu.memory_space<vmem>>, %arg4: memref<16x128xbf16, #tpu.memory_space<vmem>>) attributes {dimension_semantics = [#tpu.dimension_semantics<parallel>], iteration_bounds = array<i64: 1>, scalar_prefetch = 0 : i64, scratch_operands = 0 : i64, tpu.core_type = #tpu.core_type<tc>, window_params = [{pipeline_mode = #tpu.pipeline_mode<synchronous>, transform_indices = @transform_0, window_bounds = array<i64: 16, 128>}, {transform_indices = @transform_1, window_bounds = array<i64: 128, 128>}, {pipeline_mode = #tpu.pipeline_mode<synchronous>, transform_indices = @transform_2, window_bounds = array<i64: 16, 1>}, {transform_indices = @transform_3, window_bounds = array<i64: 16, 128>}]} {
    %c0 = arith.constant 0 : index
    %c0_0 = arith.constant 0 : index
    %0 = vector.load %arg1[%c0, %c0_0] : memref<16x128xbf16, #tpu.memory_space<vmem>>, vector<16x128xbf16>
    %c0_1 = arith.constant 0 : index
    %c0_2 = arith.constant 0 : index
    %1 = vector.load %arg2[%c0_1, %c0_2] : memref<128x128xbf16, #tpu.memory_space<vmem>>, vector<128x128xbf16>
    %cst = arith.constant dense<0.000000e+00> : vector<16x128xf32>
    %2 = tpu.matmul %0, %1, %cst {dimension_numbers = #tpu.dot_dimension_numbers<[1], [0], [0], [1], [0, 0, 1, 1], [], []>} : vector<16x128xbf16>, vector<128x128xbf16>, vector<16x128xf32> -> vector<16x128xf32>
    %c0_3 = arith.constant 0 : index
    %c0_4 = arith.constant 0 : index
    %3 = vector.load %arg3[%c0_3, %c0_4] : memref<16x1xf32, #tpu.memory_space<vmem>>, vector<16x1xf32>
    %4 = vector.broadcast %3 : vector<16x1xf32> to vector<16x128xf32>
    %5 = arith.addf %2, %4 : vector<16x128xf32>
    %cst_5 = arith.constant 0.000000e+00 : f32
    %6 = vector.broadcast %cst_5 : f32 to vector<16x128xf32>
    %7 = arith.minimumf %5, %6 : vector<16x128xf32>
    %cst_6 = arith.constant 0.000000e+00 : f32
    %8 = vector.broadcast %cst_6 : f32 to vector<16x128xf32>
    %9 = arith.cmpf ogt, %5, %8 : vector<16x128xf32>
    %10 = math.exp %7 : vector<16x128xf32>
    %cst_7 = arith.constant 1.000000e+00 : f32
    %11 = vector.broadcast %cst_7 : f32 to vector<16x128xf32>
    %12 = arith.subf %10, %11 : vector<16x128xf32>
    %13 = arith.select %9, %5, %12 : vector<16x128xi1>, vector<16x128xf32>
    %14 = arith.truncf %13 : vector<16x128xf32> to vector<16x128xbf16>
    %c0_8 = arith.constant 0 : index
    %c0_9 = arith.constant 0 : index
    %15 = vector.load %arg4[%c0_8, %c0_9] : memref<16x128xbf16, #tpu.memory_space<vmem>>, vector<16x128xbf16>
    tpu.vector_store %arg4[%c0_8, %c0_9], %14 {strides = array<i32>} : memref<16x128xbf16, #tpu.memory_space<vmem>>, vector<16x128xbf16>,
    return
  }
  func.func @transform_0(%arg0: i32) -> (i32, i32) {
    %c0_i32 = arith.constant 0 : i32
    %c0_i32_0 = arith.constant 0 : i32
    %c0_i32_1 = arith.constant 0 : i32
    return %c0_i32, %c0_i32_0 : i32, i32
  }
  func.func @transform_1(%arg0: i32) -> (i32, i32) {
    %c0_i32 = arith.constant 0 : i32
    %c0_i32_0 = arith.constant 0 : i32
    return %c0_i32, %arg0 : i32, i32
  }
  func.func @transform_2(%arg0: i32) -> (i32, i32) {
    %c0_i32 = arith.constant 0 : i32
    %c0_i32_0 = arith.constant 0 : i32
    %c0_i32_1 = arith.constant 0 : i32
    return %c0_i32, %c0_i32_0 : i32, i32
  }
  func.func @transform_3(%arg0: i32) -> (i32, i32) {
    %c0_i32 = arith.constant 0 : i32
    %c0_i32_0 = arith.constant 0 : i32
    return %c0_i32, %arg0 : i32, i32
  }
}

module attributes {stable_mosaic.version = 11 : i64} {
  func.func @_gemm_t_kernel(%arg0: i32, %arg1: memref<32x80xbf16, #tpu.memory_space<vmem>>, %arg2: memref<80x128xbf16, #tpu.memory_space<vmem>>, %arg3: memref<32x1xf32, #tpu.memory_space<vmem>>, %arg4: memref<32x128xbf16, #tpu.memory_space<vmem>>) attributes {dimension_semantics = [#tpu.dimension_semantics<parallel>], iteration_bounds = array<i64: 1>, scalar_prefetch = 0 : i64, scratch_operands = 0 : i64, tpu.core_type = #tpu.core_type<tc>, window_params = [{pipeline_mode = #tpu.pipeline_mode<synchronous>, transform_indices = @transform_0, window_bounds = array<i64: 32, 80>}, {transform_indices = @transform_1, window_bounds = array<i64: 80, 128>}, {pipeline_mode = #tpu.pipeline_mode<synchronous>, transform_indices = @transform_2, window_bounds = array<i64: 32, 1>}, {transform_indices = @transform_3, window_bounds = array<i64: 32, 128>}]} {
    %c0 = arith.constant 0 : index
    %c0_0 = arith.constant 0 : index
    %0 = vector.load %arg1[%c0, %c0_0] : memref<32x80xbf16, #tpu.memory_space<vmem>>, vector<32x80xbf16>
    %c0_1 = arith.constant 0 : index
    %c0_2 = arith.constant 0 : index
    %1 = vector.load %arg2[%c0_1, %c0_2] : memref<80x128xbf16, #tpu.memory_space<vmem>>, vector<80x128xbf16>
    %cst = arith.constant dense<0.000000e+00> : vector<32x128xf32>
    %2 = tpu.matmul %0, %1, %cst {dimension_numbers = #tpu.dot_dimension_numbers<[1], [0], [0], [1], [0, 0, 1, 1], [], []>} : vector<32x80xbf16>, vector<80x128xbf16>, vector<32x128xf32> -> vector<32x128xf32>
    %c0_3 = arith.constant 0 : index
    %c0_4 = arith.constant 0 : index
    %3 = vector.load %arg3[%c0_3, %c0_4] : memref<32x1xf32, #tpu.memory_space<vmem>>, vector<32x1xf32>
    %4 = vector.broadcast %3 : vector<32x1xf32> to vector<32x128xf32>
    %5 = arith.addf %2, %4 : vector<32x128xf32>
    %cst_5 = arith.constant 0.000000e+00 : f32
    %6 = vector.broadcast %cst_5 : f32 to vector<32x128xf32>
    %7 = arith.minimumf %5, %6 : vector<32x128xf32>
    %cst_6 = arith.constant 0.000000e+00 : f32
    %8 = vector.broadcast %cst_6 : f32 to vector<32x128xf32>
    %9 = arith.cmpf ogt, %5, %8 : vector<32x128xf32>
    %10 = math.exp %7 : vector<32x128xf32>
    %cst_7 = arith.constant 1.000000e+00 : f32
    %11 = vector.broadcast %cst_7 : f32 to vector<32x128xf32>
    %12 = arith.subf %10, %11 : vector<32x128xf32>
    %13 = arith.select %9, %5, %12 : vector<32x128xi1>, vector<32x128xf32>
    %14 = arith.truncf %13 : vector<32x128xf32> to vector<32x128xbf16>
    %c0_8 = arith.constant 0 : index
    %c0_9 = arith.constant 0 : index
    %15 = vector.load %arg4[%c0_8, %c0_9] : memref<32x128xbf16, #tpu.memory_space<vmem>>, vector<32x128xbf16>
    tpu.vector_store %arg4[%c0_8, %c0_9], %14 {strides = array<i32>} : memref<32x128xbf16, #tpu.memory_space<vmem>>, vector<32x128xbf16>,
    return
  }
  func.func @transform_0(%arg0: i32) -> (i32, i32) {
    %c0_i32 = arith.constant 0 : i32
    %c0_i32_0 = arith.constant 0 : i32
    %c0_i32_1 = arith.constant 0 : i32
    return %c0_i32, %c0_i32_0 : i32, i32
  }
  func.func @transform_1(%arg0: i32) -> (i32, i32) {
    %c0_i32 = arith.constant 0 : i32
    %c0_i32_0 = arith.constant 0 : i32
    return %c0_i32, %arg0 : i32, i32
  }
  func.func @transform_2(%arg0: i32) -> (i32, i32) {
    %c0_i32 = arith.constant 0 : i32
    %c0_i32_0 = arith.constant 0 : i32
    %c0_i32_1 = arith.constant 0 : i32
    return %c0_i32, %c0_i32_0 : i32, i32
  }
  func.func @transform_3(%arg0: i32) -> (i32, i32) {
    %c0_i32 = arith.constant 0 : i32
    %c0_i32_0 = arith.constant 0 : i32
    return %c0_i32, %arg0 : i32, i32
  }
}

module attributes {stable_mosaic.version = 11 : i64} {
  func.func @_gemm_t_kernel(%arg0: i32, %arg1: memref<16x48xbf16, #tpu.memory_space<vmem>>, %arg2: memref<48x128xbf16, #tpu.memory_space<vmem>>, %arg3: memref<16x1xf32, #tpu.memory_space<vmem>>, %arg4: memref<16x128xbf16, #tpu.memory_space<vmem>>, %arg5: memref<16x128xbf16, #tpu.memory_space<vmem>>) attributes {dimension_semantics = [#tpu.dimension_semantics<parallel>], iteration_bounds = array<i64: 1>, scalar_prefetch = 0 : i64, scratch_operands = 0 : i64, tpu.core_type = #tpu.core_type<tc>, window_params = [{pipeline_mode = #tpu.pipeline_mode<synchronous>, transform_indices = @transform_0, window_bounds = array<i64: 16, 48>}, {transform_indices = @transform_1, window_bounds = array<i64: 48, 128>}, {pipeline_mode = #tpu.pipeline_mode<synchronous>, transform_indices = @transform_2, window_bounds = array<i64: 16, 1>}, {transform_indices = @transform_3, window_bounds = array<i64: 16, 128>}, {transform_indices = @transform_4, window_bounds = array<i64: 16, 128>}]} {
    %c0 = arith.constant 0 : index
    %c0_0 = arith.constant 0 : index
    %0 = vector.load %arg1[%c0, %c0_0] : memref<16x48xbf16, #tpu.memory_space<vmem>>, vector<16x48xbf16>
    %c0_1 = arith.constant 0 : index
    %c0_2 = arith.constant 0 : index
    %1 = vector.load %arg2[%c0_1, %c0_2] : memref<48x128xbf16, #tpu.memory_space<vmem>>, vector<48x128xbf16>
    %cst = arith.constant dense<0.000000e+00> : vector<16x128xf32>
    %2 = tpu.matmul %0, %1, %cst {dimension_numbers = #tpu.dot_dimension_numbers<[1], [0], [0], [1], [0, 0, 1, 1], [], []>} : vector<16x48xbf16>, vector<48x128xbf16>, vector<16x128xf32> -> vector<16x128xf32>
    %c0_3 = arith.constant 0 : index
    %c0_4 = arith.constant 0 : index
    %3 = vector.load %arg3[%c0_3, %c0_4] : memref<16x1xf32, #tpu.memory_space<vmem>>, vector<16x1xf32>
    %4 = vector.broadcast %3 : vector<16x1xf32> to vector<16x128xf32>
    %5 = arith.addf %2, %4 : vector<16x128xf32>
    %c0_5 = arith.constant 0 : index
    %c0_6 = arith.constant 0 : index
    %6 = vector.load %arg4[%c0_5, %c0_6] : memref<16x128xbf16, #tpu.memory_space<vmem>>, vector<16x128xbf16>
    %7 = arith.extf %6 : vector<16x128xbf16> to vector<16x128xf32>
    %8 = arith.addf %5, %7 : vector<16x128xf32>
    %cst_7 = arith.constant 0.000000e+00 : f32
    %9 = vector.broadcast %cst_7 : f32 to vector<16x128xf32>
    %10 = arith.maximumf %8, %9 : vector<16x128xf32>
    %11 = arith.truncf %10 : vector<16x128xf32> to vector<16x128xbf16>
    %c0_8 = arith.constant 0 : index
    %c0_9 = arith.constant 0 : index
    %12 = vector.load %arg5[%c0_8, %c0_9] : memref<16x128xbf16, #tpu.memory_space<vmem>>, vector<16x128xbf16>
    tpu.vector_store %arg5[%c0_8, %c0_9], %11 {strides = array<i32>} : memref<16x128xbf16, #tpu.memory_space<vmem>>, vector<16x128xbf16>,
    return
  }
  func.func @transform_0(%arg0: i32) -> (i32, i32) {
    %c0_i32 = arith.constant 0 : i32
    %c0_i32_0 = arith.constant 0 : i32
    %c0_i32_1 = arith.constant 0 : i32
    return %c0_i32, %c0_i32_0 : i32, i32
  }
  func.func @transform_1(%arg0: i32) -> (i32, i32) {
    %c0_i32 = arith.constant 0 : i32
    %c0_i32_0 = arith.constant 0 : i32
    return %c0_i32, %arg0 : i32, i32
  }
  func.func @transform_2(%arg0: i32) -> (i32, i32) {
    %c0_i32 = arith.constant 0 : i32
    %c0_i32_0 = arith.constant 0 : i32
    %c0_i32_1 = arith.constant 0 : i32
    return %c0_i32, %c0_i32_0 : i32, i32
  }
  func.func @transform_3(%arg0: i32) -> (i32, i32) {
    %c0_i32 = arith.constant 0 : i32
    %c0_i32_0 = arith.constant 0 : i32
    return %c0_i32, %arg0 : i32, i32
  }
  func.func @transform_4(%arg0: i32) -> (i32, i32) {
    %c0_i32 = arith.constant 0 : i32
    %c0_i32_0 = arith.constant 0 : i32
    return %c0_i32, %arg0 : i32, i32
  }
}

module attributes {stable_mosaic.version = 11 : i64} {
  func.func @_gemm_t_kernel(%arg0: i32, %arg1: memref<16x48xbf16, #tpu.memory_space<vmem>>, %arg2: memref<48x128xbf16, #tpu.memory_space<vmem>>, %arg3: memref<16x1xf32, #tpu.memory_space<vmem>>, %arg4: memref<16x128xbf16, #tpu.memory_space<vmem>>) attributes {dimension_semantics = [#tpu.dimension_semantics<parallel>], iteration_bounds = array<i64: 1>, scalar_prefetch = 0 : i64, scratch_operands = 0 : i64, tpu.core_type = #tpu.core_type<tc>, window_params = [{pipeline_mode = #tpu.pipeline_mode<synchronous>, transform_indices = @transform_0, window_bounds = array<i64: 16, 48>}, {transform_indices = @transform_1, window_bounds = array<i64: 48, 128>}, {pipeline_mode = #tpu.pipeline_mode<synchronous>, transform_indices = @transform_2, window_bounds = array<i64: 16, 1>}, {transform_indices = @transform_3, window_bounds = array<i64: 16, 128>}]} {
    %c0 = arith.constant 0 : index
    %c0_0 = arith.constant 0 : index
    %0 = vector.load %arg1[%c0, %c0_0] : memref<16x48xbf16, #tpu.memory_space<vmem>>, vector<16x48xbf16>
    %c0_1 = arith.constant 0 : index
    %c0_2 = arith.constant 0 : index
    %1 = vector.load %arg2[%c0_1, %c0_2] : memref<48x128xbf16, #tpu.memory_space<vmem>>, vector<48x128xbf16>
    %cst = arith.constant dense<0.000000e+00> : vector<16x128xf32>
    %2 = tpu.matmul %0, %1, %cst {dimension_numbers = #tpu.dot_dimension_numbers<[1], [0], [0], [1], [0, 0, 1, 1], [], []>} : vector<16x48xbf16>, vector<48x128xbf16>, vector<16x128xf32> -> vector<16x128xf32>
    %c0_3 = arith.constant 0 : index
    %c0_4 = arith.constant 0 : index
    %3 = vector.load %arg3[%c0_3, %c0_4] : memref<16x1xf32, #tpu.memory_space<vmem>>, vector<16x1xf32>
    %4 = vector.broadcast %3 : vector<16x1xf32> to vector<16x128xf32>
    %5 = arith.addf %2, %4 : vector<16x128xf32>
    %cst_5 = arith.constant 0.000000e+00 : f32
    %6 = vector.broadcast %cst_5 : f32 to vector<16x128xf32>
    %7 = arith.minimumf %5, %6 : vector<16x128xf32>
    %cst_6 = arith.constant 0.000000e+00 : f32
    %8 = vector.broadcast %cst_6 : f32 to vector<16x128xf32>
    %9 = arith.cmpf ogt, %5, %8 : vector<16x128xf32>
    %10 = math.exp %7 : vector<16x128xf32>
    %cst_7 = arith.constant 1.000000e+00 : f32
    %11 = vector.broadcast %cst_7 : f32 to vector<16x128xf32>
    %12 = arith.subf %10, %11 : vector<16x128xf32>
    %13 = arith.select %9, %5, %12 : vector<16x128xi1>, vector<16x128xf32>
    %14 = arith.truncf %13 : vector<16x128xf32> to vector<16x128xbf16>
    %c0_8 = arith.constant 0 : index
    %c0_9 = arith.constant 0 : index
    %15 = vector.load %arg4[%c0_8, %c0_9] : memref<16x128xbf16, #tpu.memory_space<vmem>>, vector<16x128xbf16>
    tpu.vector_store %arg4[%c0_8, %c0_9], %14 {strides = array<i32>} : memref<16x128xbf16, #tpu.memory_space<vmem>>, vector<16x128xbf16>,
    return
  }
  func.func @transform_0(%arg0: i32) -> (i32, i32) {
    %c0_i32 = arith.constant 0 : i32
    %c0_i32_0 = arith.constant 0 : i32
    %c0_i32_1 = arith.constant 0 : i32
    return %c0_i32, %c0_i32_0 : i32, i32
  }
  func.func @transform_1(%arg0: i32) -> (i32, i32) {
    %c0_i32 = arith.constant 0 : i32
    %c0_i32_0 = arith.constant 0 : i32
    return %c0_i32, %arg0 : i32, i32
  }
  func.func @transform_2(%arg0: i32) -> (i32, i32) {
    %c0_i32 = arith.constant 0 : i32
    %c0_i32_0 = arith.constant 0 : i32
    %c0_i32_1 = arith.constant 0 : i32
    return %c0_i32, %c0_i32_0 : i32, i32
  }
  func.func @transform_3(%arg0: i32) -> (i32, i32) {
    %c0_i32 = arith.constant 0 : i32
    %c0_i32_0 = arith.constant 0 : i32
    return %c0_i32, %arg0 : i32, i32
  }
}

module attributes {stable_mosaic.version = 11 : i64} {
  func.func @_gemm_t_kernel(%arg0: i32, %arg1: memref<16x16xbf16, #tpu.memory_space<vmem>>, %arg2: memref<16x256xbf16, #tpu.memory_space<vmem>>, %arg3: memref<16x1xf32, #tpu.memory_space<vmem>>, %arg4: memref<16x256xbf16, #tpu.memory_space<vmem>>) attributes {dimension_semantics = [#tpu.dimension_semantics<parallel>], iteration_bounds = array<i64: 2>, scalar_prefetch = 0 : i64, scratch_operands = 0 : i64, tpu.core_type = #tpu.core_type<tc>, window_params = [{pipeline_mode = #tpu.pipeline_mode<synchronous>, transform_indices = @transform_0, window_bounds = array<i64: 16, 16>}, {transform_indices = @transform_1, window_bounds = array<i64: 16, 256>}, {pipeline_mode = #tpu.pipeline_mode<synchronous>, transform_indices = @transform_2, window_bounds = array<i64: 16, 1>}, {transform_indices = @transform_3, window_bounds = array<i64: 16, 256>}]} {
    %c0 = arith.constant 0 : index
    %c0_0 = arith.constant 0 : index
    %0 = vector.load %arg1[%c0, %c0_0] : memref<16x16xbf16, #tpu.memory_space<vmem>>, vector<16x16xbf16>
    %c0_1 = arith.constant 0 : index
    %c0_2 = arith.constant 0 : index
    %1 = vector.load %arg2[%c0_1, %c0_2] : memref<16x256xbf16, #tpu.memory_space<vmem>>, vector<16x256xbf16>
    %cst = arith.constant dense<0.000000e+00> : vector<16x256xf32>
    %2 = tpu.matmul %0, %1, %cst {dimension_numbers = #tpu.dot_dimension_numbers<[1], [0], [0], [1], [0, 0, 1, 1], [], []>} : vector<16x16xbf16>, vector<16x256xbf16>, vector<16x256xf32> -> vector<16x256xf32>
    %c0_3 = arith.constant 0 : index
    %c0_4 = arith.constant 0 : index
    %3 = vector.load %arg3[%c0_3, %c0_4] : memref<16x1xf32, #tpu.memory_space<vmem>>, vector<16x1xf32>
    %4 = vector.broadcast %3 : vector<16x1xf32> to vector<16x256xf32>
    %5 = arith.addf %2, %4 : vector<16x256xf32>
    %cst_5 = arith.constant 0.000000e+00 : f32
    %6 = vector.broadcast %cst_5 : f32 to vector<16x256xf32>
    %7 = arith.minimumf %5, %6 : vector<16x256xf32>
    %cst_6 = arith.constant 0.000000e+00 : f32
    %8 = vector.broadcast %cst_6 : f32 to vector<16x256xf32>
    %9 = arith.cmpf ogt, %5, %8 : vector<16x256xf32>
    %10 = math.exp %7 : vector<16x256xf32>
    %cst_7 = arith.constant 1.000000e+00 : f32
    %11 = vector.broadcast %cst_7 : f32 to vector<16x256xf32>
    %12 = arith.subf %10, %11 : vector<16x256xf32>
    %13 = arith.select %9, %5, %12 : vector<16x256xi1>, vector<16x256xf32>
    %14 = arith.truncf %13 : vector<16x256xf32> to vector<16x256xbf16>
    %c0_8 = arith.constant 0 : index
    %c0_9 = arith.constant 0 : index
    %15 = vector.load %arg4[%c0_8, %c0_9] : memref<16x256xbf16, #tpu.memory_space<vmem>>, vector<16x256xbf16>
    tpu.vector_store %arg4[%c0_8, %c0_9], %14 {strides = array<i32>} : memref<16x256xbf16, #tpu.memory_space<vmem>>, vector<16x256xbf16>,
    return
  }
  func.func @transform_0(%arg0: i32) -> (i32, i32) {
    %c0_i32 = arith.constant 0 : i32
    %c0_i32_0 = arith.constant 0 : i32
    %c0_i32_1 = arith.constant 0 : i32
    return %c0_i32, %c0_i32_0 : i32, i32
  }
  func.func @transform_1(%arg0: i32) -> (i32, i32) {
    %c0_i32 = arith.constant 0 : i32
    %c0_i32_0 = arith.constant 0 : i32
    return %c0_i32, %arg0 : i32, i32
  }
  func.func @transform_2(%arg0: i32) -> (i32, i32) {
    %c0_i32 = arith.constant 0 : i32
    %c0_i32_0 = arith.constant 0 : i32
    %c0_i32_1 = arith.constant 0 : i32
    return %c0_i32, %c0_i32_0 : i32, i32
  }
  func.func @transform_3(%arg0: i32) -> (i32, i32) {
    %c0_i32 = arith.constant 0 : i32
    %c0_i32_0 = arith.constant 0 : i32
    return %c0_i32, %arg0 : i32, i32
  }
}

module attributes {stable_mosaic.version = 11 : i64} {
  func.func @_gemm_t_kernel(%arg0: i32, %arg1: memref<16x16xbf16, #tpu.memory_space<vmem>>, %arg2: memref<16x256xbf16, #tpu.memory_space<vmem>>, %arg3: memref<16x1xf32, #tpu.memory_space<vmem>>, %arg4: memref<16x256xbf16, #tpu.memory_space<vmem>>, %arg5: memref<16x256xbf16, #tpu.memory_space<vmem>>) attributes {dimension_semantics = [#tpu.dimension_semantics<parallel>], iteration_bounds = array<i64: 2>, scalar_prefetch = 0 : i64, scratch_operands = 0 : i64, tpu.core_type = #tpu.core_type<tc>, window_params = [{pipeline_mode = #tpu.pipeline_mode<synchronous>, transform_indices = @transform_0, window_bounds = array<i64: 16, 16>}, {transform_indices = @transform_1, window_bounds = array<i64: 16, 256>}, {pipeline_mode = #tpu.pipeline_mode<synchronous>, transform_indices = @transform_2, window_bounds = array<i64: 16, 1>}, {transform_indices = @transform_3, window_bounds = array<i64: 16, 256>}, {transform_indices = @transform_4, window_bounds = array<i64: 16, 256>}]} {
    %c0 = arith.constant 0 : index
    %c0_0 = arith.constant 0 : index
    %0 = vector.load %arg1[%c0, %c0_0] : memref<16x16xbf16, #tpu.memory_space<vmem>>, vector<16x16xbf16>
    %c0_1 = arith.constant 0 : index
    %c0_2 = arith.constant 0 : index
    %1 = vector.load %arg2[%c0_1, %c0_2] : memref<16x256xbf16, #tpu.memory_space<vmem>>, vector<16x256xbf16>
    %cst = arith.constant dense<0.000000e+00> : vector<16x256xf32>
    %2 = tpu.matmul %0, %1, %cst {dimension_numbers = #tpu.dot_dimension_numbers<[1], [0], [0], [1], [0, 0, 1, 1], [], []>} : vector<16x16xbf16>, vector<16x256xbf16>, vector<16x256xf32> -> vector<16x256xf32>
    %c0_3 = arith.constant 0 : index
    %c0_4 = arith.constant 0 : index
    %3 = vector.load %arg3[%c0_3, %c0_4] : memref<16x1xf32, #tpu.memory_space<vmem>>, vector<16x1xf32>
    %4 = vector.broadcast %3 : vector<16x1xf32> to vector<16x256xf32>
    %5 = arith.addf %2, %4 : vector<16x256xf32>
    %c0_5 = arith.constant 0 : index
    %c0_6 = arith.constant 0 : index
    %6 = vector.load %arg4[%c0_5, %c0_6] : memref<16x256xbf16, #tpu.memory_space<vmem>>, vector<16x256xbf16>
    %7 = arith.extf %6 : vector<16x256xbf16> to vector<16x256xf32>
    %8 = arith.addf %5, %7 : vector<16x256xf32>
    %cst_7 = arith.constant 0.000000e+00 : f32
    %9 = vector.broadcast %cst_7 : f32 to vector<16x256xf32>
    %10 = arith.maximumf %8, %9 : vector<16x256xf32>
    %11 = arith.truncf %10 : vector<16x256xf32> to vector<16x256xbf16>
    %c0_8 = arith.constant 0 : index
    %c0_9 = arith.constant 0 : index
    %12 = vector.load %arg5[%c0_8, %c0_9] : memref<16x256xbf16, #tpu.memory_space<vmem>>, vector<16x256xbf16>
    tpu.vector_store %arg5[%c0_8, %c0_9], %11 {strides = array<i32>} : memref<16x256xbf16, #tpu.memory_space<vmem>>, vector<16x256xbf16>,
    return
  }
  func.func @transform_0(%arg0: i32) -> (i32, i32) {
    %c0_i32 = arith.constant 0 : i32
    %c0_i32_0 = arith.constant 0 : i32
    %c0_i32_1 = arith.constant 0 : i32
    return %c0_i32, %c0_i32_0 : i32, i32
  }
  func.func @transform_1(%arg0: i32) -> (i32, i32) {
    %c0_i32 = arith.constant 0 : i32
    %c0_i32_0 = arith.constant 0 : i32
    return %c0_i32, %arg0 : i32, i32
  }
  func.func @transform_2(%arg0: i32) -> (i32, i32) {
    %c0_i32 = arith.constant 0 : i32
    %c0_i32_0 = arith.constant 0 : i32
    %c0_i32_1 = arith.constant 0 : i32
    return %c0_i32, %c0_i32_0 : i32, i32
  }
  func.func @transform_3(%arg0: i32) -> (i32, i32) {
    %c0_i32 = arith.constant 0 : i32
    %c0_i32_0 = arith.constant 0 : i32
    return %c0_i32, %arg0 : i32, i32
  }
  func.func @transform_4(%arg0: i32) -> (i32, i32) {
    %c0_i32 = arith.constant 0 : i32
    %c0_i32_0 = arith.constant 0 : i32
    return %c0_i32, %arg0 : i32, i32
  }
}

</mosaic_0001>

<bundles_post_ra>
// kernel: forward.16
= control target key start
LH: loop header
LB: loop body
LE: loop exit
PB: predicated region body
PF: predicated region fallthrough
CT: control target
= control target key end

     0   :  { %s501_s12 = smov 0   ;;  %s503_s13 = smov 0   ;;  %s570_s0 = inlined_call_operand.vmem [shape: bf16[16,16], index: 0, kind: input, shape index: {}]   ;;  %s571_s1 = inlined_call_operand.vmem [shape: bf16[16,512], index: 1, kind: input, shape index: {}]   ;;  %s572_s2 = inlined_call_operand.vmem [shape: f32[16,1], index: 2, kind: input, shape index: {}]   ;;  %s573_s3 = inlined_call_operand.vmem [shape: bf16[16,512], index: 3, kind: output, shape index: {}]  }
   0x1   :  { %s505_s14 = smov 0  }
   0x2 LB: > { %s401_s15 = sadd.s32 4294967295, %s478_s14   ;;  %s518_s16 = sadd.s32 1, %s478_s14   ;;  %s478_s14 = sphi %s505_s14, %s577_s14   ;;  %s474_s13 = sphi %s503_s13, %s576_s13   ;;  %s470_s12 = sphi %s501_s12, %s575_s12  }
   0x3   : > { %s38_s17 = ssub.s32 %s478_s14, %s518_s16  ;;  %s41_s18 = sadd.s32 1, %s474_s13 }
   0x4   : > { %p39_p0 = scmp.eq.s32.totalorder %s38_s17, 0  ;;  %p48_p1 = scmp.ne.s32.totalorder %s474_s13, %s470_s12 }
   0x5   : > { %p49_p2 = scmp.eq.s32.totalorder %s478_s14, 0  ;;  %p99_p3 = scmp.eq.s32.totalorder %s401_s15, 1 }
   0x6   : > { %s529_s19 = scalar_select %p39_p0, %s474_s13, %s41_s18  }
   0x7   : > { %p50_p4 = por %p49_p2, %p48_p1  ;;  %p531_p5 = por %p99_p3, %p48_p1 }
   0x8   : > { %p404_p6 = scmp.ge.s32.totalorder %s478_s14, 2 }
   0xa   : > { %127 = sbr.rel (%p404_p6) target bundleno = 24 (0x18), region = 24 }
  0x11   : > { %130 = sbr.rel (!%p50_p4) target bundleno = 24 (0x18), region = 28  ;;  %s132_s21 = sand.u32 (%p50_p4), 1, %s474_s13  }
  0x12   : > { %s422_s22 = sshll.u32 (%p50_p4), %s478_s14, 3  ;;  %s405_s23 = sshll.u32 (%p50_p4), %s132_s21, 4 }
  0x13   : > { %s137_s26 = scalar_lea.vmem (%p50_p4), %s571_s1, %s422_s22  ;;  %s134_s27 = scalar_lea.vmem (%p50_p4), [#allocation2], %s405_s23 }
  0x14   : > { %v167_v0 = vld [vmem:[%s137_s26] sm:$0xff] (%p50_p4)  ;;  %v169_v1 = vld [vmem:[%s137_s26 + $0x10] sm:$0xff] (%p50_p4) }
  0x15   : > { %168 = vst [vmem:[%s134_s27] sm:$0xff] (%p50_p4), %v167_v0  ;;  %170 = vst [vmem:[%s134_s27 + $0x8] sm:$0xff] (%p50_p4), %v169_v1 }
  0x18 PF: > { %p408_p7 = scmp.ge.s32.totalorder %s478_s14, 1  ;;  %p175_p8 = scmp.lt.s32.totalorder %s478_s14, 3 }
  0x1a   : > { %p176_p9 = pnand %p408_p7, %p175_p8 }
  0x1b   : > { %s182_s28 = sand.u32 (!%p176_p9), 1, %s470_s12   ;;  %v480_v2 = vmov (!%p176_p9), 0   ;;  %v211_v3 = vld [vmem:[%s572_s2] sm:$0xff] (!%p176_p9)  ;;  %v212_v4 = vld [vmem:[%s572_s2 + $0x8] sm:$0xff] (!%p176_p9)  ;;  %vm238_vm0 = vcmask (!%p176_p9), 130048  }
  0x1c   : > { %179 = sbr.rel (%p176_p9) target bundleno = 263 (0x107), region = 66  ;;  %s409_s29 = sshll.u32 (!%p176_p9), %s182_s28, 4  ;;  %274 = vmatprep.mubr.bf16.mxu0 (!%p176_p9), %v480_v2  ;;  %451 = vset.pattern.permute.xlu0 (!%p176_p9), %v480_v2  ;;  %v455_v7 = vld [vmem:[%s570_s0] sm:$0xff] (!%p176_p9)  }
  0x1d   : > { %215 = vperm.xlu0 (!%p176_p9), %451, %v211_v3   ;;  %s184_s7 = scalar_lea.vmem (!%p176_p9), [#allocation2], %s409_s29  ;;  %s203_s10 = scalar_lea.vmem (!%p176_p9), [#allocation3], %s409_s29 }
  0x1e   : > { %v452_v5 = vld [vmem:[%s184_s7 + $0x4] ss:$8 sps:$4 sm:$0xff] (!%p176_p9)   ;;  %v454_v6 = vld [vmem:[%s184_s7] ss:$8 sps:$4 sm:$0xff] (!%p176_p9)  }
  0x1f   : > { %242 = vmatprep.subr.bf16.mxu0 (!%p176_p9), %v452_v5 }
  0x20   : > { %243 = vmatpush1.bf16.msra.mxu0 (!%p176_p9), %v454_v6 }
  0x21   : > { %220 = vperm.xlu0 (!%p176_p9), %451, %v212_v4  }
  0x23   : > { %414 = vmatmul.mubr.msk.bf16.vlgmr.msra.gmra.mrb[0].mxu0 %vm238_vm0, %v455_v7  ;;  %s425_s11 = sshll.u32 (%p531_p5), %s401_s15, 3 }
  0x24   : > { %s308_s18 = scalar_lea.vmem (%p531_p5), %s573_s3, %s425_s11 }
  0x9c   : > { %v216_v8 = vpop.permute.xlu0 %215 }
  0xa0   : > { %v221_v12 = vpop.permute.xlu0 %220 }
  0xf6   : > { %v276_v9 = vpop.f32.mrb[0].mxu0 }
  0xf7   : > { %v277_v10 = vadd.f32 %v276_v9, %v216_v8  ;;  %v278_v11 = vpop.f32.mrb[1].mxu0 }
  0xf8   : > { %v279_v13 = vadd.f32 %v278_v11, %v216_v8  ;;  %v280_v14 = vpop.f32.mrb[2].mxu0  ;;  %305 = sbr.rel (!%p531_p5) target bundleno = 263 (0x107), region = 74 }
  0xf9   : > { %v281_v15 = vadd.f32 %v280_v14, %v221_v12  ;;  %v282_v16 = vpop.f32.mrb[3].mxu0 }
  0xfa   : > { %v423_v17 = vpack.c.bf16 %v279_v13, %v277_v10  ;;  %v283_v18 = vadd.f32 %v282_v16, %v221_v12 }
  0xfc   : > { %297 = vst [vmem:[%s203_s10] sm:$0xff] %v423_v17  ;;  %v424_v19 = vpack.c.bf16 %v283_v18, %v281_v15 }
  0xfe   : > { %298 = vst [vmem:[%s203_s10 + $0x8] sm:$0xff] %v424_v19 }
 0x103   : > { %v338_v20 = vld [vmem:[%s203_s10] sm:$0xff] }
 0x104   : > { %339 = vst [vmem:[%s308_s18] sm:$0xff] %v338_v20 }
 0x105   : > { %v340_v21 = vld [vmem:[%s203_s10 + $0x8] sm:$0xff] }
 0x106   : > { %341 = vst [vmem:[%s308_s18 + $0x10] sm:$0xff] %v340_v21 }
 0x107 PF: > { %p10_p10 = scmp.ge.s32.totalorder %s518_s16, 4   ;;  %s575_s12 = smov %s474_s13 }
 0x108   : > { %s576_s13 = smov %s529_s19  ;;  %s577_s14 = smov %s518_s16 }
 0x109   :  { %12 = sbr.rel (!%p10_p10) target bundleno = 2 (0x2), region = 143 }

// kernel: forward.17
= control target key start
LH: loop header
LB: loop body
LE: loop exit
PB: predicated region body
PF: predicated region fallthrough
CT: control target
= control target key end

     0   :  { %s587_s12 = smov 0   ;;  %s589_s13 = smov 0   ;;  %s660_s0 = inlined_call_operand.vmem [shape: bf16[16,48], index: 0, kind: input, shape index: {}]   ;;  %s661_s1 = inlined_call_operand.vmem [shape: bf16[48,512], index: 1, kind: input, shape index: {}]   ;;  %s662_s2 = inlined_call_operand.vmem [shape: f32[16,1], index: 2, kind: input, shape index: {}]   ;;  %s663_s3 = inlined_call_operand.vmem [shape: bf16[16,512], index: 3, kind: output, shape index: {}]  }
   0x1   :  { %s591_s14 = smov 0  }
   0x2 LB: > { %s465_s15 = sadd.s32 4294967295, %s564_s14   ;;  %s604_s16 = sadd.s32 1, %s564_s14   ;;  %s564_s14 = sphi %s591_s14, %s667_s14   ;;  %s560_s13 = sphi %s589_s13, %s666_s13   ;;  %s556_s12 = sphi %s587_s12, %s665_s12  }
   0x3   : > { %s38_s17 = ssub.s32 %s564_s14, %s604_s16  ;;  %s41_s18 = sadd.s32 1, %s560_s13 }
   0x4   : > { %p39_p0 = scmp.eq.s32.totalorder %s38_s17, 0  ;;  %p48_p1 = scmp.ne.s32.totalorder %s560_s13, %s556_s12 }
   0x5   : > { %p49_p2 = scmp.eq.s32.totalorder %s564_s14, 0  ;;  %p99_p3 = scmp.eq.s32.totalorder %s465_s15, 1 }
   0x6   : > { %s615_s19 = scalar_select %p39_p0, %s560_s13, %s41_s18  }
   0x7   : > { %p50_p4 = por %p49_p2, %p48_p1  ;;  %p617_p5 = por %p99_p3, %p48_p1 }
   0x8   : > { %p468_p6 = scmp.ge.s32.totalorder %s564_s14, 2 }
   0xa   : > { %127 = sbr.rel (%p468_p6) target bundleno = 24 (0x18), region = 24 }
  0x11   : > { %130 = sbr.rel (!%p50_p4) target bundleno = 24 (0x18), region = 28  ;;  %s132_s21 = sand.u32 (%p50_p4), 1, %s560_s13  }
  0x12   : > { %s492_s22 = sshll.u32 (%p50_p4), %s564_s14, 3  ;;  %s496_s23 = smul.u32 (%p50_p4), 48, %s132_s21 }
  0x13   : > { %s137_s26 = scalar_lea.vmem (%p50_p4), %s661_s1, %s492_s22 }
  0x14   : > { %v175_v0 = vld [vmem:[%s137_s26] sm:$0xff] (%p50_p4)  ;;  %v177_v1 = vld [vmem:[%s137_s26 + $0x10] sm:$0xff] (%p50_p4)  ;;  %s134_s27 = scalar_lea.vmem (%p50_p4), [#allocation2], %s496_s23 }
  0x15   : > { %v179_v2 = vld [vmem:[%s137_s26 + $0x20] sm:$0xff] (%p50_p4)  ;;  %v181_v3 = vld [vmem:[%s137_s26 + $0x30] sm:$0xff] (%p50_p4)  ;;  %176 = vst [vmem:[%s134_s27] sm:$0xff] (%p50_p4), %v175_v0  ;;  %178 = vst [vmem:[%s134_s27 + $0x8] sm:$0xff] (%p50_p4), %v177_v1 }
  0x16   : > { %v183_v4 = vld [vmem:[%s137_s26 + $0x40] sm:$0xff] (%p50_p4)  ;;  %v185_v5 = vld [vmem:[%s137_s26 + $0x50] sm:$0xff] (%p50_p4)  ;;  %180 = vst [vmem:[%s134_s27 + $0x10] sm:$0xff] (%p50_p4), %v179_v2  ;;  %182 = vst [vmem:[%s134_s27 + $0x18] sm:$0xff] (%p50_p4), %v181_v3 }
  0x17   : > { %184 = vst [vmem:[%s134_s27 + $0x20] sm:$0xff] (%p50_p4), %v183_v4  ;;  %186 = vst [vmem:[%s134_s27 + $0x28] sm:$0xff] (%p50_p4), %v185_v5 }
  0x18 PF: > { %p471_p7 = scmp.ge.s32.totalorder %s564_s14, 1  ;;  %p191_p8 = scmp.lt.s32.totalorder %s564_s14, 3 }
  0x1a   : > { %p192_p9 = pnand %p471_p7, %p191_p8 }
  0x1b   : > { %s198_s28 = sand.u32 (!%p192_p9), 1, %s556_s12   ;;  %v566_v6 = vmov (!%p192_p9), 0   ;;  %v231_v7 = vld [vmem:[%s662_s2] sm:$0xff] (!%p192_p9)  ;;  %v232_v8 = vld [vmem:[%s662_s2 + $0x8] sm:$0xff] (!%p192_p9)  ;;  %vm278_vm0 = vcmask (!%p192_p9), 392192  }
  0x1c   : > { %195 = sbr.rel (%p192_p9) target bundleno = 291 (0x123), region = 66  ;;  %314 = vmatprep.mubr.bf16.mxu0 (!%p192_p9), %v566_v6  ;;  %523 = vset.pattern.permute.xlu0 (!%p192_p9), %v566_v6  ;;  %v533_v15 = vld [vmem:[%s660_s0] sm:$0xff] (!%p192_p9)   ;;  %s472_s10 = sshll.u32 (!%p192_p9), %s198_s28, 4 }
  0x1d   : > { %s497_s29 = smul.u32 (!%p192_p9), 48, %s198_s28  ;;  %235 = vperm.xlu0 (!%p192_p9), %523, %v231_v7   ;;  %s219_s11 = scalar_lea.vmem (!%p192_p9), [#allocation3], %s472_s10 }
  0x1f   : > { %s200_s7 = scalar_lea.vmem (!%p192_p9), [#allocation2], %s497_s29 }
  0x20   : > { %v524_v9 = vld [vmem:[%s200_s7 + $0x4] ss:$8 sps:$4 sm:$0xff] (!%p192_p9)   ;;  %v526_v10 = vld [vmem:[%s200_s7] ss:$8 sps:$4 sm:$0xff] (!%p192_p9)   ;;  %v527_v11 = vld [vmem:[%s200_s7 + $0x14] ss:$8 sps:$4 sm:$0xff] (!%p192_p9)  }
  0x21   : > { %282 = vmatprep.subr.bf16.mxu0 (!%p192_p9), %v524_v9  ;;  %240 = vperm.xlu0 (!%p192_p9), %523, %v232_v8   ;;  %v529_v12 = vld [vmem:[%s200_s7 + $0x10] ss:$8 sps:$4 sm:$0xff] (!%p192_p9)   ;;  %v530_v13 = vld [vmem:[%s200_s7 + $0x24] ss:$8 sps:$4 sm:$0xff] (!%p192_p9)   ;;  %v532_v14 = vld [vmem:[%s200_s7 + $0x20] ss:$8 sps:$4 sm:$0xff] (!%p192_p9)  }
  0x22   : > { %283 = vmatpush1.bf16.msra.mxu0 (!%p192_p9), %v526_v10 }
  0x23   : > { %284 = vmatprep.subr.bf16.mxu0 %v527_v11  ;;  %s495_s12 = sshll.u32 (%p617_p5), %s465_s15, 3 }
  0x24   : > { %s372_s21 = scalar_lea.vmem (%p617_p5), %s663_s3, %s495_s12 }
  0x26   : > { %285 = vmatpush1.bf16.msra.mxu0 %v529_v12 }
  0x27   : > { %286 = vmatprep.subr.bf16.mxu0 %v530_v13 }
  0x2a   : > { %287 = vmatpush1.bf16.msra.mxu0 %v532_v14 }
  0x2d   : > { %480 = vmatmul.mubr.msk.bf16.vlgmr.msra.gmra.mrb[0].mxu0 %vm278_vm0, %v533_v15 }
  0x9c   : > { %v236_v16 = vpop.permute.xlu0 %235 }
  0xa0   : > { %v241_v20 = vpop.permute.xlu0 %240 }
 0x100   : > { %v316_v17 = vpop.f32.mrb[0].mxu0 }
 0x101   : > { %v317_v18 = vadd.f32 %v316_v17, %v236_v16  ;;  %v318_v19 = vpop.f32.mrb[1].mxu0 }
 0x102   : > { %v319_v21 = vadd.f32 %v318_v19, %v236_v16  ;;  %v320_v22 = vpop.f32.mrb[2].mxu0 }
 0x103   : > { %v325_v23 = vmin.f32 %v317_v18, 0.0  ;;  %v321_v24 = vadd.f32 %v320_v22, %v241_v20  ;;  %v322_v25 = vpop.f32.mrb[3].mxu0  ;;  %vm329_vm1 = vcmp.gt.f32.partialorder %v317_v18, 0.0 }
 0x104   : > { %v326_v26 = vmin.f32 %v319_v21, 0.0  ;;  %v323_v27 = vadd.f32 %v322_v25, %v241_v20  ;;  %vm330_vm2 = vcmp.gt.f32.partialorder %v319_v21, 0.0 }
 0x105   : > { %v333_v28 = vmul.f32 1.442695, %v325_v23  ;;  %v327_v29 = vmin.f32 %v321_v24, 0.0  ;;  %vm331_vm3 = vcmp.gt.f32.partialorder %v321_v24, 0.0 }
 0x106   : > { %v335_v30 = vmul.f32 1.442695, %v326_v26  ;;  %v328_v31 = vmin.f32 %v323_v27, 0.0  ;;  %vm332_vm4 = vcmp.gt.f32.partialorder %v323_v27, 0.0 }
 0x107   : > { %534 = vpow2.f32 %v333_v28  ;;  %v337_v32 = vmul.f32 1.442695, %v327_v29 }
 0x108   : > { %536 = vpow2.f32 %v335_v30  ;;  %v339_v33 = vmul.f32 1.442695, %v328_v31 }
 0x109   : > { %538 = vpow2.f32 %v337_v32 }
 0x10a   : > { %540 = vpow2.f32 %v339_v33 }
 0x111   : > { %v535_v34 = vpop.eup %534 }
 0x112   : > { %v537_v35 = vpop.eup %536  ;;  %v481_v36 = vadd.f32 -1.0, %v535_v34 }
 0x113   : > { %v539_v37 = vpop.eup %538  ;;  %v482_v38 = vadd.f32 -1.0, %v537_v35 }
 0x114   : > { %v541_v39 = vpop.eup %540  ;;  %v345_v40 = vsel %vm329_vm1, %v317_v18, %v481_v36  ;;  %v483_v41 = vadd.f32 -1.0, %v539_v37  ;;  %369 = sbr.rel (!%p617_p5) target bundleno = 291 (0x123), region = 74 }
 0x115   : > { %v346_v42 = vsel %vm330_vm2, %v319_v21, %v482_v38  ;;  %v484_v43 = vadd.f32 -1.0, %v541_v39 }
 0x116   : > { %v493_v44 = vpack.c.bf16 %v346_v42, %v345_v40  ;;  %v347_v45 = vsel %vm331_vm3, %v321_v24, %v483_v41 }
 0x117   : > { %v348_v46 = vsel %vm332_vm4, %v323_v27, %v484_v43 }
 0x118   : > { %361 = vst [vmem:[%s219_s11] sm:$0xff] %v493_v44  ;;  %v494_v47 = vpack.c.bf16 %v348_v46, %v347_v45 }
 0x11a   : > { %362 = vst [vmem:[%s219_s11 + $0x8] sm:$0xff] %v494_v47 }
 0x11f   : > { %v402_v48 = vld [vmem:[%s219_s11] sm:$0xff] }
 0x120   : > { %403 = vst [vmem:[%s372_s21] sm:$0xff] %v402_v48 }
 0x121   : > { %v404_v49 = vld [vmem:[%s219_s11 + $0x8] sm:$0xff] }
 0x122   : > { %405 = vst [vmem:[%s372_s21 + $0x10] sm:$0xff] %v404_v49 }
 0x123 PF: > { %p10_p10 = scmp.ge.s32.totalorder %s604_s16, 4   ;;  %s665_s12 = smov %s560_s13 }
 0x124   : > { %s666_s13 = smov %s615_s19  ;;  %s667_s14 = smov %s604_s16 }
 0x125   :  { %12 = sbr.rel (!%p10_p10) target bundleno = 2 (0x2), region = 143 }

// kernel: forward.18
= control target key start
LH: loop header
LB: loop body
LE: loop exit
PB: predicated region body
PF: predicated region fallthrough
CT: control target
= control target key end

     0   :  { %s680_s15 = smov 0   ;;  %s682_s16 = smov 0   ;;  %s762_s0 = inlined_call_operand.vmem [shape: bf16[16,48], index: 0, kind: input, shape index: {}]   ;;  %s763_s1 = inlined_call_operand.vmem [shape: bf16[48,512], index: 1, kind: input, shape index: {}]   ;;  %s764_s2 = inlined_call_operand.vmem [shape: f32[16,1], index: 2, kind: input, shape index: {}]   ;;  %s765_s3 = inlined_call_operand.vmem [shape: bf16[16,512], index: 3, kind: input, shape index: {}]   ;;  %s766_s4 = inlined_call_operand.vmem [shape: bf16[16,512], index: 4, kind: output, shape index: {}]  }
   0x1   :  { %s684_s17 = smov 0  }
   0x2 LB: > { %s560_s18 = sadd.s32 4294967295, %s652_s17   ;;  %s697_s19 = sadd.s32 1, %s652_s17   ;;  %s652_s17 = sphi %s684_s17, %s771_s17   ;;  %s648_s16 = sphi %s682_s16, %s770_s16   ;;  %s644_s15 = sphi %s680_s15, %s769_s15  }
   0x3   : > { %s39_s20 = ssub.s32 %s652_s17, %s697_s19  ;;  %s42_s21 = sadd.s32 1, %s648_s16 }
   0x4   : > { %p40_p0 = scmp.eq.s32.totalorder %s39_s20, 0  ;;  %p49_p1 = scmp.ne.s32.totalorder %s648_s16, %s644_s15 }
   0x5   : > { %p50_p2 = scmp.eq.s32.totalorder %s652_s17, 0  ;;  %p126_p3 = scmp.eq.s32.totalorder %s560_s18, 1 }
   0x6   : > { %s708_s22 = scalar_select %p40_p0, %s648_s16, %s42_s21  }
   0x7   : > { %p710_p4 = por %p50_p2, %p49_p1  ;;  %p714_p5 = por %p126_p3, %p49_p1 }
   0x8   : > { %p563_p6 = scmp.ge.s32.totalorder %s652_s17, 2 }
   0xa   : > { %154 = sbr.rel (%p563_p6) target bundleno = 31 (0x1f), region = 24 }
  0x11   : > { %157 = sbr.rel (!%p710_p4) target bundleno = 24 (0x18), region = 28  ;;  %s159_s25 = sand.u32 (%p710_p4), 1, %s648_s16  }
  0x12   : > { %s587_s26 = sshll.u32 (%p710_p4), %s652_s17, 3  ;;  %s592_s27 = smul.u32 (%p710_p4), 48, %s159_s25 }
  0x13   : > { %s164_s30 = scalar_lea.vmem (%p710_p4), %s763_s1, %s587_s26 }
  0x14   : > { %v202_v0 = vld [vmem:[%s164_s30] sm:$0xff] (%p710_p4)  ;;  %v204_v1 = vld [vmem:[%s164_s30 + $0x10] sm:$0xff] (%p710_p4)  ;;  %s161_s5 = scalar_lea.vmem (%p710_p4), [#allocation2], %s592_s27 }
  0x15   : > { %v206_v2 = vld [vmem:[%s164_s30 + $0x20] sm:$0xff] (%p710_p4)  ;;  %v208_v3 = vld [vmem:[%s164_s30 + $0x30] sm:$0xff] (%p710_p4)  ;;  %203 = vst [vmem:[%s161_s5] sm:$0xff] (%p710_p4), %v202_v0  ;;  %205 = vst [vmem:[%s161_s5 + $0x8] sm:$0xff] (%p710_p4), %v204_v1 }
  0x16   : > { %v210_v4 = vld [vmem:[%s164_s30 + $0x40] sm:$0xff] (%p710_p4)  ;;  %v212_v5 = vld [vmem:[%s164_s30 + $0x50] sm:$0xff] (%p710_p4)  ;;  %207 = vst [vmem:[%s161_s5 + $0x10] sm:$0xff] (%p710_p4), %v206_v2  ;;  %209 = vst [vmem:[%s161_s5 + $0x18] sm:$0xff] (%p710_p4), %v208_v3 }
  0x17   : > { %211 = vst [vmem:[%s161_s5 + $0x20] sm:$0xff] (%p710_p4), %v210_v4  ;;  %213 = vst [vmem:[%s161_s5 + $0x28] sm:$0xff] (%p710_p4), %v212_v5 }
  0x18 PF: > { %219 = sbr.rel (!%p710_p4) target bundleno = 31 (0x1f), region = 66  ;;  %s221_s6 = sand.u32 (%p710_p4), 1, %s648_s16  }
  0x19   : > { %s588_s7 = sshll.u32 (%p710_p4), %s652_s17, 3  ;;  %s566_s8 = sshll.u32 (%p710_p4), %s221_s6, 4 }
  0x1a   : > { %s226_s11 = scalar_lea.vmem (%p710_p4), %s765_s3, %s588_s7  ;;  %s223_s12 = scalar_lea.vmem (%p710_p4), [#allocation3], %s566_s8 }
  0x1b   : > { %v256_v6 = vld [vmem:[%s226_s11] sm:$0xff] (%p710_p4)  ;;  %v258_v7 = vld [vmem:[%s226_s11 + $0x10] sm:$0xff] (%p710_p4) }
  0x1c   : > { %257 = vst [vmem:[%s223_s12] sm:$0xff] (%p710_p4), %v256_v6  ;;  %259 = vst [vmem:[%s223_s12 + $0x8] sm:$0xff] (%p710_p4), %v258_v7 }
  0x1f PF: > { %p569_p7 = scmp.ge.s32.totalorder %s652_s17, 1  ;;  %p264_p8 = scmp.lt.s32.totalorder %s652_s17, 3 }
  0x21   : > { %p265_p9 = pnand %p569_p7, %p264_p8 }
  0x22   : > { %s271_s13 = sand.u32 (!%p265_p9), 1, %s644_s15   ;;  %v654_v8 = vmov (!%p265_p9), 0   ;;  %v318_v9 = vld [vmem:[%s764_s2] sm:$0xff] (!%p265_p9)  ;;  %v319_v10 = vld [vmem:[%s764_s2 + $0x8] sm:$0xff] (!%p265_p9)  ;;  %vm365_vm0 = vcmask (!%p265_p9), 392192  }
  0x23   : > { %268 = sbr.rel (%p265_p9) target bundleno = 284 (0x11c), region = 104  ;;  %401 = vmatprep.mubr.bf16.mxu0 (!%p265_p9), %v654_v8  ;;  %619 = vset.pattern.permute.xlu0 (!%p265_p9), %v654_v8  ;;  %v629_v17 = vld [vmem:[%s762_s0] sm:$0xff] (!%p265_p9)   ;;  %s570_s28 = sshll.u32 (!%p265_p9), %s271_s13, 4 }
  0x24   : > { %s593_s14 = smul.u32 (!%p265_p9), 48, %s271_s13  ;;  %322 = vperm.xlu0 (!%p265_p9), %619, %v318_v9   ;;  %s280_s29 = scalar_lea.vmem (!%p265_p9), [#allocation3], %s570_s28 }
  0x25   : > { %v412_v19 = vld [vmem:[%s280_s29] sm:$0xff] (!%p265_p9)  ;;  %v413_v20 = vld [vmem:[%s280_s29 + $0x8] sm:$0xff] (!%p265_p9)  ;;  %s305_s30 = scalar_lea.vmem (!%p265_p9), [#allocation4], %s570_s28 }
  0x26   : > { %s273_s26 = scalar_lea.vmem (!%p265_p9), [#allocation2], %s593_s14  ;;  %v414_v21 = vunpack.c.l.bf16 (!%p265_p9), %v412_v19  ;;  %v415_v23 = vunpack.c.h.bf16 (!%p265_p9), %v412_v19  ;;  %v416_v26 = vunpack.c.l.bf16 (!%p265_p9), %v413_v20  ;;  %v417_v30 = vunpack.c.h.bf16 (!%p265_p9), %v413_v20 }
  0x27   : > { %v620_v11 = vld [vmem:[%s273_s26 + $0x4] ss:$8 sps:$4 sm:$0xff] (!%p265_p9)   ;;  %v622_v12 = vld [vmem:[%s273_s26] ss:$8 sps:$4 sm:$0xff] (!%p265_p9)   ;;  %v623_v13 = vld [vmem:[%s273_s26 + $0x14] ss:$8 sps:$4 sm:$0xff] (!%p265_p9)  }
  0x28   : > { %369 = vmatprep.subr.bf16.mxu0 (!%p265_p9), %v620_v11  ;;  %327 = vperm.xlu0 (!%p265_p9), %619, %v319_v10   ;;  %v625_v14 = vld [vmem:[%s273_s26 + $0x10] ss:$8 sps:$4 sm:$0xff] (!%p265_p9)   ;;  %v626_v15 = vld [vmem:[%s273_s26 + $0x24] ss:$8 sps:$4 sm:$0xff] (!%p265_p9)   ;;  %v628_v16 = vld [vmem:[%s273_s26 + $0x20] ss:$8 sps:$4 sm:$0xff] (!%p265_p9)  }
  0x29   : > { %370 = vmatpush1.bf16.msra.mxu0 (!%p265_p9), %v622_v12 }
  0x2a   : > { %371 = vmatprep.subr.bf16.mxu0 %v623_v13  ;;  %s591_s5 = sshll.u32 (%p714_p5), %s560_s18, 3 }
  0x2b   : > { %s449_s8 = scalar_lea.vmem (%p714_p5), %s766_s4, %s591_s5 }
  0x2d   : > { %372 = vmatpush1.bf16.msra.mxu0 %v625_v14 }
  0x2e   : > { %373 = vmatprep.subr.bf16.mxu0 %v626_v15 }
  0x31   : > { %374 = vmatpush1.bf16.msra.mxu0 %v628_v16 }
  0x34   : > { %579 = vmatmul.mubr.msk.bf16.vlgmr.msra.gmra.mrb[0].mxu0 %vm365_vm0, %v629_v17 }
  0xa3   : > { %v323_v18 = vpop.permute.xlu0 %322 }
  0xa7   : > { %v328_v27 = vpop.permute.xlu0 %327 }
 0x107   : > { %v403_v22 = vpop.f32.mrb[0].mxu0 }
 0x108   : > { %v404_v24 = vadd.f32 %v403_v22, %v323_v18  ;;  %v405_v25 = vpop.f32.mrb[1].mxu0 }
 0x109   : > { %v406_v28 = vadd.f32 %v405_v25, %v323_v18  ;;  %v407_v29 = vpop.f32.mrb[2].mxu0 }
 0x10a   : > { %v418_v31 = vadd.f32 %v414_v21, %v404_v24  ;;  %v408_v32 = vadd.f32 %v407_v29, %v328_v27  ;;  %v409_v33 = vpop.f32.mrb[3].mxu0 }
 0x10b   : > { %v419_v34 = vadd.f32 %v415_v23, %v406_v28  ;;  %v410_v35 = vadd.f32 %v409_v33, %v328_v27 }
 0x10c   : > { %v422_v36 = vmax.f32 %v418_v31, 0.0  ;;  %v420_v37 = vadd.f32 %v416_v26, %v408_v32 }
 0x10d   : > { %v423_v38 = vmax.f32 %v419_v34, 0.0  ;;  %v421_v39 = vadd.f32 %v417_v30, %v410_v35  ;;  %446 = sbr.rel (!%p714_p5) target bundleno = 284 (0x11c), region = 116 }
 0x10e   : > { %v424_v40 = vmax.f32 %v420_v37, 0.0 }
 0x10f   : > { %v589_v41 = vpack.c.bf16 %v423_v38, %v422_v36  ;;  %v425_v42 = vmax.f32 %v421_v39, 0.0 }
 0x111   : > { %438 = vst [vmem:[%s305_s30] sm:$0xff] %v589_v41  ;;  %v590_v43 = vpack.c.bf16 %v425_v42, %v424_v40 }
 0x113   : > { %439 = vst [vmem:[%s305_s30 + $0x8] sm:$0xff] %v590_v43 }
 0x118   : > { %v479_v44 = vld [vmem:[%s305_s30] sm:$0xff] }
 0x119   : > { %480 = vst [vmem:[%s449_s8] sm:$0xff] %v479_v44 }
 0x11a   : > { %v481_v45 = vld [vmem:[%s305_s30 + $0x8] sm:$0xff] }
 0x11b   : > { %482 = vst [vmem:[%s449_s8 + $0x10] sm:$0xff] %v481_v45 }
 0x11c PF: > { %p11_p10 = scmp.ge.s32.totalorder %s697_s19, 4   ;;  %s769_s15 = smov %s648_s16 }
 0x11d   : > { %s770_s16 = smov %s708_s22  ;;  %s771_s17 = smov %s697_s19 }
 0x11e   :  { %13 = sbr.rel (!%p11_p10) target bundleno = 2 (0x2), region = 193 }

// kernel: forward.20
= control target key start
LH: loop header
LB: loop body
LE: loop exit
PB: predicated region body
PF: predicated region fallthrough
CT: control target
= control target key end

     0   :  { %v127_v0 = vmov 0.0   ;;  %vm128_vm0 = vmmov 0   ;;  %v129_v3 = vmov 0   ;;  %vm42_vm1 = vcmask 130048   ;;  %s165_s1 = inlined_call_operand.vmem [shape: bf16[16,128], index: 1, kind: input, shape index: {}]   ;;  %s166_s0 = inlined_call_operand.vmem [shape: bf16[16,16], index: 0, kind: input, shape index: {}]   ;;  %s167_s2 = inlined_call_operand.vmem [shape: f32[16,1], index: 2, kind: input, shape index: {}]   ;;  %s168_s3 = inlined_call_operand.vmem [shape: bf16[16,128], index: 3, kind: output, shape index: {}]  }
   0x1   :  { %115 = vmatprep.subr.bf16.mxu0 %v127_v0  ;;  %v125_v1 = vld [vmem:[%s165_s1] sm:$0xff]   ;;  %117 = vmatprep.mubr.msk.bf16.mxu0 %vm128_vm0, %v127_v0  ;;  %v20_v5 = vld [vmem:[%s167_s2 + $0x8] sm:$0xff] }
   0x2   :  { %v126_v2 = vld [vmem:[%s166_s0] sm:$0xff]   ;;  %124 = vset.pattern.permute.xlu0 %v129_v3  ;;  %116 = vmatpush3.bf16.msra.mxu0 %v125_v1 }
   0x3   :  { %v19_v4 = vld [vmem:[%s167_s2] sm:$0xff] }
   0x4   :  { %23 = vperm.xlu0 %124, %v19_v4  }
   0x5   :  { %118 = vmatmul.mubr.msk.bf16.vlgmr.msra.gmra.mrb[0].mxu0 %vm42_vm1, %v126_v2 }
   0x8   :  { %28 = vperm.xlu0 %124, %v20_v5  }
  0x83   :  { %v24_v6 = vpop.permute.xlu0 %23 }
  0x87   :  { %v29_v9 = vpop.permute.xlu0 %28 }
  0xd8   :  { %v80_v7 = vpop.f32.mrb[0].mxu0 }
  0xd9   :  { %v119_v8 = vpop.f32.mrb[1].mxu0  ;;  %v81_v11 = vadd.f32 %v80_v7, %v24_v6 }
  0xda   :  { %v83_v10 = vpop.f32.mrb[2].mxu0 }
  0xdb   :  { %v84_v12 = vadd.f32 %v83_v10, %v29_v9  ;;  %v120_v13 = vpop.f32.mrb[3].mxu0 }
  0xdd   :  { %v111_v14 = vpack.c.bf16 %v84_v12, %v81_v11 }
  0xdf   :  { %112 = vst [vmem:[%s168_s3] sm:$0xff] %v111_v14  }

// kernel: forward.19
= control target key start
LH: loop header
LB: loop body
LE: loop exit
PB: predicated region body
PF: predicated region fallthrough
CT: control target
= control target key end

     0   :  { %v184_v0 = vmov 0.0   ;;  %vm185_vm0 = vmmov 0   ;;  %v186_v2 = vmov 0   ;;  %vm66_vm1 = vcmask 523264   ;;  %s231_s1 = inlined_call_operand.vmem [shape: bf16[64,128], index: 1, kind: input, shape index: {}]   ;;  %s232_s2 = inlined_call_operand.vmem [shape: f32[16,1], index: 2, kind: input, shape index: {}]   ;;  %s233_s0 = inlined_call_operand.vmem [shape: bf16[16,64], index: 0, kind: input, shape index: {}]   ;;  %s234_s3 = inlined_call_operand.vmem [shape: bf16[16,128], index: 3, kind: output, shape index: {}]  }
   0x1   :  { %159 = vmatprep.subr.bf16.mxu0 %v184_v0  ;;  %v175_v1 = vld [vmem:[%s231_s1] sm:$0xff]   ;;  %167 = vmatprep.mubr.msk.bf16.mxu0 %vm185_vm0, %v184_v0  ;;  %v176_v3 = vld [vmem:[%s231_s1 + $0x8] sm:$0xff]   ;;  %v177_v5 = vld [vmem:[%s231_s1 + $0x10] sm:$0xff]  }
   0x2   :  { %174 = vset.pattern.permute.xlu0 %v186_v2  ;;  %160 = vmatpush3.bf16.msra.mxu0 %v175_v1  ;;  %v25_v4 = vld [vmem:[%s232_s2] sm:$0xff]  ;;  %v26_v6 = vld [vmem:[%s232_s2 + $0x8] sm:$0xff]  ;;  %v178_v7 = vld [vmem:[%s231_s1 + $0x18] sm:$0xff]  }
   0x3   :  { %161 = vmatprep.subr.bf16.mxu0 %v184_v0  ;;  %29 = vperm.xlu0 %174, %v25_v4   ;;  %v179_v8 = vld [vmem:[%s233_s0] sm:$0xff]  }
   0x6   :  { %162 = vmatpush3.bf16.msra.mxu0 %v176_v3 }
   0x7   :  { %163 = vmatprep.subr.bf16.mxu0 %v184_v0  ;;  %34 = vperm.xlu0 %174, %v26_v6  }
   0xa   :  { %164 = vmatpush3.bf16.msra.mxu0 %v177_v5 }
   0xb   :  { %165 = vmatprep.subr.bf16.mxu0 %v184_v0 }
   0xe   :  { %166 = vmatpush3.bf16.msra.mxu0 %v178_v7 }
  0x11   :  { %168 = vmatmul.mubr.msk.bf16.vlgmr.msra.gmra.mrb[0].mxu0 %vm66_vm1, %v179_v8 }
  0x82   :  { %v30_v9 = vpop.permute.xlu0 %29 }
  0x86   :  { %v35_v13 = vpop.permute.xlu0 %34 }
  0xe4   :  { %v104_v10 = vpop.f32.mrb[0].mxu0 }
  0xe5   :  { %v105_v11 = vadd.f32 %v104_v10, %v30_v9  ;;  %v169_v12 = vpop.f32.mrb[1].mxu0 }
  0xe6   :  { %v107_v14 = vpop.f32.mrb[2].mxu0 }
  0xe7   :  { %v111_v15 = vmin.f32 %v105_v11, 0.0  ;;  %v108_v16 = vadd.f32 %v107_v14, %v35_v13  ;;  %v170_v17 = vpop.f32.mrb[3].mxu0  ;;  %vm113_vm2 = vcmp.gt.f32.partialorder %v105_v11, 0.0 }
  0xe9   :  { %v115_v18 = vmul.f32 1.442695, %v111_v15  ;;  %v112_v19 = vmin.f32 %v108_v16, 0.0  ;;  %vm114_vm3 = vcmp.gt.f32.partialorder %v108_v16, 0.0 }
  0xeb   :  { %180 = vpow2.f32 %v115_v18  ;;  %v117_v20 = vmul.f32 1.442695, %v112_v19 }
  0xed   :  { %182 = vpow2.f32 %v117_v20 }
  0xf5   :  { %v181_v21 = vpop.eup %180 }
  0xf6   :  { %v143_v22 = vadd.f32 -1.0, %v181_v21 }
  0xf7   :  { %v183_v23 = vpop.eup %182 }
  0xf8   :  { %v144_v24 = vadd.f32 -1.0, %v183_v23  ;;  %v121_v25 = vsel %vm113_vm2, %v105_v11, %v143_v22 }
  0xfa   :  { %v122_v26 = vsel %vm114_vm3, %v108_v16, %v144_v24 }
  0xfb   :  { %v152_v27 = vpack.c.bf16 %v122_v26, %v121_v25 }
  0xfd   :  { %153 = vst [vmem:[%s234_s3] sm:$0xff] %v152_v27  }

// kernel: forward.21
= control target key start
LH: loop header
LB: loop body
LE: loop exit
PB: predicated region body
PF: predicated region fallthrough
CT: control target
= control target key end

     0   :  { %v197_v0 = vmov 0.0   ;;  %vm198_vm0 = vmmov 0   ;;  %v199_v2 = vmov 0   ;;  %vm74_vm1 = vcmask 654336   ;;  %s247_s1 = inlined_call_operand.vmem [shape: bf16[80,128], index: 1, kind: input, shape index: {}]   ;;  %s248_s2 = inlined_call_operand.vmem [shape: f32[16,1], index: 2, kind: input, shape index: {}]   ;;  %s249_s0 = inlined_call_operand.vmem [shape: bf16[16,80], index: 0, kind: input, shape index: {}]   ;;  %s250_s3 = inlined_call_operand.vmem [shape: bf16[16,128], index: 3, kind: output, shape index: {}]  }
   0x1   :  { %169 = vmatprep.subr.bf16.mxu0 %v197_v0  ;;  %v187_v1 = vld [vmem:[%s247_s1] sm:$0xff]   ;;  %179 = vmatprep.mubr.msk.bf16.mxu0 %vm198_vm0, %v197_v0  ;;  %v188_v3 = vld [vmem:[%s247_s1 + $0x8] sm:$0xff]   ;;  %v189_v4 = vld [vmem:[%s247_s1 + $0x10] sm:$0xff]  }
   0x2   :  { %186 = vset.pattern.permute.xlu0 %v199_v2  ;;  %170 = vmatpush3.bf16.msra.mxu0 %v187_v1  ;;  %v27_v5 = vld [vmem:[%s248_s2] sm:$0xff]  ;;  %v28_v6 = vld [vmem:[%s248_s2 + $0x8] sm:$0xff]  ;;  %v190_v7 = vld [vmem:[%s247_s1 + $0x18] sm:$0xff]  }
   0x3   :  { %171 = vmatprep.subr.bf16.mxu0 %v197_v0  ;;  %31 = vperm.xlu0 %186, %v27_v5   ;;  %v191_v8 = vld [vmem:[%s247_s1 + $0x20] sm:$0xff]  }
   0x4   :  { %v192_v9 = vld [vmem:[%s249_s0] sm:$0xff]  }
   0x6   :  { %172 = vmatpush3.bf16.msra.mxu0 %v188_v3 }
   0x7   :  { %173 = vmatprep.subr.bf16.mxu0 %v197_v0  ;;  %36 = vperm.xlu0 %186, %v28_v6  }
   0xa   :  { %174 = vmatpush3.bf16.msra.mxu0 %v189_v4 }
   0xb   :  { %175 = vmatprep.subr.bf16.mxu0 %v197_v0 }
   0xe   :  { %176 = vmatpush3.bf16.msra.mxu0 %v190_v7 }
   0xf   :  { %177 = vmatprep.subr.bf16.mxu0 %v197_v0 }
  0x12   :  { %178 = vmatpush3.bf16.msra.mxu0 %v191_v8 }
  0x15   :  { %180 = vmatmul.mubr.msk.bf16.vlgmr.msra.gmra.mrb[0].mxu0 %vm74_vm1, %v192_v9 }
  0x82   :  { %v32_v10 = vpop.permute.xlu0 %31 }
  0x86   :  { %v37_v14 = vpop.permute.xlu0 %36 }
  0xe8   :  { %v112_v11 = vpop.f32.mrb[0].mxu0 }
  0xe9   :  { %v113_v12 = vadd.f32 %v112_v11, %v32_v10  ;;  %v181_v13 = vpop.f32.mrb[1].mxu0 }
  0xea   :  { %v115_v15 = vpop.f32.mrb[2].mxu0 }
  0xeb   :  { %v119_v16 = vmin.f32 %v113_v12, 0.0  ;;  %v116_v17 = vadd.f32 %v115_v15, %v37_v14  ;;  %v182_v18 = vpop.f32.mrb[3].mxu0  ;;  %vm121_vm2 = vcmp.gt.f32.partialorder %v113_v12, 0.0 }
  0xed   :  { %v123_v19 = vmul.f32 1.442695, %v119_v16  ;;  %v120_v20 = vmin.f32 %v116_v17, 0.0  ;;  %vm122_vm3 = vcmp.gt.f32.partialorder %v116_v17, 0.0 }
  0xef   :  { %193 = vpow2.f32 %v123_v19  ;;  %v125_v21 = vmul.f32 1.442695, %v120_v20 }
  0xf1   :  { %195 = vpow2.f32 %v125_v21 }
  0xf9   :  { %v194_v22 = vpop.eup %193 }
  0xfa   :  { %v152_v23 = vadd.f32 -1.0, %v194_v22 }
  0xfb   :  { %v196_v24 = vpop.eup %195 }
  0xfc   :  { %v153_v25 = vadd.f32 -1.0, %v196_v24  ;;  %v129_v26 = vsel %vm121_vm2, %v113_v12, %v152_v23 }
  0xfe   :  { %v130_v27 = vsel %vm122_vm3, %v116_v17, %v153_v25 }
  0xff   :  { %v161_v28 = vpack.c.bf16 %v130_v27, %v129_v26 }
 0x101   :  { %162 = vst [vmem:[%s250_s3] sm:$0xff] %v161_v28  }

// kernel: forward.22
= control target key start
LH: loop header
LB: loop body
LE: loop exit
PB: predicated region body
PF: predicated region fallthrough
CT: control target
= control target key end

     0   :  { %v194_v0 = vmov 0.0   ;;  %vm195_vm0 = vmmov 0   ;;  %v196_v2 = vmov 0   ;;  %vm77_vm1 = vcmask 654336   ;;  %s252_s1 = inlined_call_operand.vmem [shape: bf16[80,128], index: 1, kind: input, shape index: {}]   ;;  %s253_s2 = inlined_call_operand.vmem [shape: f32[16,1], index: 2, kind: input, shape index: {}]   ;;  %s254_s0 = inlined_call_operand.vmem [shape: bf16[16,80], index: 0, kind: input, shape index: {}]   ;;  %s255_s3 = inlined_call_operand.vmem [shape: bf16[16,128], index: 3, kind: input, shape index: {}]   ;;  %s256_s4 = inlined_call_operand.vmem [shape: bf16[16,128], index: 4, kind: output, shape index: {}]  }
   0x1   :  { %170 = vmatprep.subr.bf16.mxu0 %v194_v0  ;;  %v188_v1 = vld [vmem:[%s252_s1] sm:$0xff]   ;;  %180 = vmatprep.mubr.msk.bf16.mxu0 %vm195_vm0, %v194_v0  ;;  %v189_v3 = vld [vmem:[%s252_s1 + $0x8] sm:$0xff]   ;;  %v190_v4 = vld [vmem:[%s252_s1 + $0x10] sm:$0xff]  }
   0x2   :  { %187 = vset.pattern.permute.xlu0 %v196_v2  ;;  %171 = vmatpush3.bf16.msra.mxu0 %v188_v1  ;;  %v30_v5 = vld [vmem:[%s253_s2] sm:$0xff]  ;;  %v31_v6 = vld [vmem:[%s253_s2 + $0x8] sm:$0xff]  ;;  %v191_v7 = vld [vmem:[%s252_s1 + $0x18] sm:$0xff]  }
   0x3   :  { %172 = vmatprep.subr.bf16.mxu0 %v194_v0  ;;  %34 = vperm.xlu0 %187, %v30_v5   ;;  %v192_v8 = vld [vmem:[%s252_s1 + $0x20] sm:$0xff]  }
   0x4   :  { %v193_v9 = vld [vmem:[%s254_s0] sm:$0xff]  }
   0x5   :  { %v156_v11 = vld [vmem:[%s255_s3] sm:$0xff]  }
   0x6   :  { %173 = vmatpush3.bf16.msra.mxu0 %v189_v3  ;;  %v157_v12 = vunpack.c.l.bf16 %v156_v11  ;;  %v158_v16 = vunpack.c.h.bf16 %v156_v11 }
   0x7   :  { %174 = vmatprep.subr.bf16.mxu0 %v194_v0  ;;  %39 = vperm.xlu0 %187, %v31_v6  }
   0xa   :  { %175 = vmatpush3.bf16.msra.mxu0 %v190_v4 }
   0xb   :  { %176 = vmatprep.subr.bf16.mxu0 %v194_v0 }
   0xe   :  { %177 = vmatpush3.bf16.msra.mxu0 %v191_v7 }
   0xf   :  { %178 = vmatprep.subr.bf16.mxu0 %v194_v0 }
  0x12   :  { %179 = vmatpush3.bf16.msra.mxu0 %v192_v8 }
  0x15   :  { %181 = vmatmul.mubr.msk.bf16.vlgmr.msra.gmra.mrb[0].mxu0 %vm77_vm1, %v193_v9 }
  0x82   :  { %v35_v10 = vpop.permute.xlu0 %34 }
  0x86   :  { %v40_v17 = vpop.permute.xlu0 %39 }
  0xe8   :  { %v115_v13 = vpop.f32.mrb[0].mxu0 }
  0xe9   :  { %v116_v14 = vadd.f32 %v115_v13, %v35_v10  ;;  %v182_v15 = vpop.f32.mrb[1].mxu0 }
  0xea   :  { %v118_v18 = vpop.f32.mrb[2].mxu0 }
  0xeb   :  { %v126_v19 = vadd.f32 %v157_v12, %v116_v14  ;;  %v119_v20 = vadd.f32 %v118_v18, %v40_v17  ;;  %v183_v21 = vpop.f32.mrb[3].mxu0 }
  0xed   :  { %v127_v22 = vadd.f32 %v158_v16, %v119_v20  ;;  %v128_v23 = vmax.f32 %v126_v19, 0.0 }
  0xef   :  { %v129_v24 = vmax.f32 %v127_v22, 0.0 }
  0xf1   :  { %v162_v25 = vpack.c.bf16 %v129_v24, %v128_v23 }
  0xf3   :  { %163 = vst [vmem:[%s256_s4] sm:$0xff] %v162_v25  }

// kernel: forward.23
= control target key start
LH: loop header
LB: loop body
LE: loop exit
PB: predicated region body
PF: predicated region fallthrough
CT: control target
= control target key end

     0   :  { %v232_v0 = vmov 0.0   ;;  %vm233_vm0 = vmmov 0   ;;  %v234_v2 = vmov 0   ;;  %s291_s1 = inlined_call_operand.vmem [shape: bf16[128,128], index: 1, kind: input, shape index: {}]   ;;  %s292_s2 = inlined_call_operand.vmem [shape: f32[16,1], index: 2, kind: input, shape index: {}]   ;;  %s293_s0 = inlined_call_operand.vmem [shape: bf16[16,128], index: 0, kind: input, shape index: {}]   ;;  %s294_s3 = inlined_call_operand.vmem [shape: bf16[16,128], index: 3, kind: output, shape index: {}]  }
   0x1   :  { %195 = vmatprep.subr.bf16.mxu0 %v232_v0  ;;  %v219_v1 = vld [vmem:[%s291_s1] sm:$0xff]   ;;  %211 = vmatprep.mubr.msk.bf16.mxu0 %vm233_vm0, %v232_v0  ;;  %v220_v3 = vld [vmem:[%s291_s1 + $0x8] sm:$0xff]   ;;  %v221_v4 = vld [vmem:[%s291_s1 + $0x10] sm:$0xff]  }
   0x2   :  { %218 = vset.pattern.permute.xlu0 %v234_v2  ;;  %196 = vmatpush3.bf16.msra.mxu0 %v219_v1  ;;  %v33_v5 = vld [vmem:[%s292_s2] sm:$0xff]  ;;  %v222_v6 = vld [vmem:[%s291_s1 + $0x18] sm:$0xff]   ;;  %v34_v7 = vld [vmem:[%s292_s2 + $0x8] sm:$0xff] }
   0x3   :  { %197 = vmatprep.subr.bf16.mxu0 %v232_v0  ;;  %37 = vperm.xlu0 %218, %v33_v5   ;;  %v223_v8 = vld [vmem:[%s291_s1 + $0x20] sm:$0xff]   ;;  %v224_v9 = vld [vmem:[%s291_s1 + $0x28] sm:$0xff]   ;;  %v225_v10 = vld [vmem:[%s291_s1 + $0x30] sm:$0xff]  }
   0x4   :  { %v226_v11 = vld [vmem:[%s291_s1 + $0x38] sm:$0xff]   ;;  %v227_v12 = vld [vmem:[%s293_s0] sm:$0xff]  }
   0x6   :  { %198 = vmatpush3.bf16.msra.mxu0 %v220_v3 }
   0x7   :  { %199 = vmatprep.subr.bf16.mxu0 %v232_v0  ;;  %42 = vperm.xlu0 %218, %v34_v7  }
   0xa   :  { %200 = vmatpush3.bf16.msra.mxu0 %v221_v4 }
   0xb   :  { %201 = vmatprep.subr.bf16.mxu0 %v232_v0 }
   0xe   :  { %202 = vmatpush3.bf16.msra.mxu0 %v222_v6 }
   0xf   :  { %203 = vmatprep.subr.bf16.mxu0 %v232_v0 }
  0x12   :  { %204 = vmatpush3.bf16.msra.mxu0 %v223_v8 }
  0x13   :  { %205 = vmatprep.subr.bf16.mxu0 %v232_v0 }
  0x16   :  { %206 = vmatpush3.bf16.msra.mxu0 %v224_v9 }
  0x17   :  { %207 = vmatprep.subr.bf16.mxu0 %v232_v0 }
  0x1a   :  { %208 = vmatpush3.bf16.msra.mxu0 %v225_v10 }
  0x1b   :  { %209 = vmatprep.subr.bf16.mxu0 %v232_v0 }
  0x1e   :  { %210 = vmatpush3.bf16.msra.mxu0 %v226_v11 }
  0x21   :  { %212 = vmatmul.mubr.bf16.vlgmr.msra.gmra.mrb[0].mxu0 %v227_v12 }
  0x82   :  { %v38_v13 = vpop.permute.xlu0 %37 }
  0x86   :  { %v43_v17 = vpop.permute.xlu0 %42 }
  0xf4   :  { %v133_v14 = vpop.f32.mrb[0].mxu0 }
  0xf5   :  { %v134_v15 = vadd.f32 %v133_v14, %v38_v13  ;;  %v213_v16 = vpop.f32.mrb[1].mxu0 }
  0xf6   :  { %v136_v18 = vpop.f32.mrb[2].mxu0 }
  0xf7   :  { %v140_v19 = vmin.f32 %v134_v15, 0.0  ;;  %v137_v20 = vadd.f32 %v136_v18, %v43_v17  ;;  %v214_v21 = vpop.f32.mrb[3].mxu0  ;;  %vm142_vm1 = vcmp.gt.f32.partialorder %v134_v15, 0.0 }
  0xf9   :  { %v144_v22 = vmul.f32 1.442695, %v140_v19  ;;  %v141_v23 = vmin.f32 %v137_v20, 0.0  ;;  %vm143_vm2 = vcmp.gt.f32.partialorder %v137_v20, 0.0 }
  0xfb   :  { %228 = vpow2.f32 %v144_v22  ;;  %v146_v24 = vmul.f32 1.442695, %v141_v23 }
  0xfd   :  { %230 = vpow2.f32 %v146_v24 }
 0x105   :  { %v229_v25 = vpop.eup %228 }
 0x106   :  { %v175_v26 = vadd.f32 -1.0, %v229_v25 }
 0x107   :  { %v231_v27 = vpop.eup %230 }
 0x108   :  { %v176_v28 = vadd.f32 -1.0, %v231_v27  ;;  %v150_v29 = vsel %vm142_vm1, %v134_v15, %v175_v26 }
 0x10a   :  { %v151_v30 = vsel %vm143_vm2, %v137_v20, %v176_v28 }
 0x10b   :  { %v184_v31 = vpack.c.bf16 %v151_v30, %v150_v29 }
 0x10d   :  { %185 = vst [vmem:[%s294_s3] sm:$0xff] %v184_v31  }

// kernel: forward.24
= control target key start
LH: loop header
LB: loop body
LE: loop exit
PB: predicated region body
PF: predicated region fallthrough
CT: control target
= control target key end

     0   :  { %v268_v1 = vmov 0   ;;  %vm93_vm0 = vcmask 654336   ;;  %s330_s1 = inlined_call_operand.vmem [shape: bf16[80,128], index: 1, kind: input, shape index: {}]   ;;  %s331_s0 = inlined_call_operand.vmem [shape: bf16[32,80], index: 0, kind: input, shape index: {}]   ;;  %s332_s2 = inlined_call_operand.vmem [shape: f32[32,1], index: 2, kind: input, shape index: {}]   ;;  %s333_s3 = inlined_call_operand.vmem [shape: bf16[32,128], index: 3, kind: output, shape index: {}]  }
   0x1   :  { %v253_v0 = vld [vmem:[%s330_s1] sm:$0xff]   ;;  %252 = vset.pattern.permute.xlu1 %v268_v1  ;;  %251 = vset.pattern.permute.xlu0 %v268_v1  ;;  %v254_v2 = vld [vmem:[%s330_s1 + $0x8] sm:$0xff]   ;;  %v255_v3 = vld [vmem:[%s330_s1 + $0x10] sm:$0xff]  }
   0x2   :  { %236 = vmatprep.subr.bf16.mxu0 %v253_v0  ;;  %v258_v4 = vld [vmem:[%s331_s0] sm:$0xff]   ;;  %v31_v5 = vld [vmem:[%s332_s2 + $0x10] sm:$0xff]  ;;  %v256_v7 = vld [vmem:[%s330_s1 + $0x18] sm:$0xff]  }
   0x3   :  { %237 = vmatpush3.bf16.msra.mxu0 %v253_v0  ;;  %246 = vmatprep.mubr.msk.bf16.mxu0 %vm93_vm0, %v258_v4  ;;  %v29_v6 = vld [vmem:[%s332_s2] sm:$0xff]  ;;  %v32_v8 = vld [vmem:[%s332_s2 + $0x18] sm:$0xff]  ;;  %v30_v9 = vld [vmem:[%s332_s2 + $0x8] sm:$0xff] }
   0x4   :  { %238 = vmatprep.subr.bf16.mxu0 %v254_v2  ;;  %45 = vperm.xlu1 %252, %v31_v5   ;;  %v257_v10 = vld [vmem:[%s330_s1 + $0x20] sm:$0xff]   ;;  %v259_v11 = vld [vmem:[%s331_s0 + $0x8] sm:$0xff]  }
   0x5   :  { %35 = vperm.xlu0 %251, %v29_v6  }
   0x7   :  { %239 = vmatpush3.bf16.msra.mxu0 %v254_v2 }
   0x8   :  { %240 = vmatprep.subr.bf16.mxu0 %v255_v3  ;;  %50 = vperm.xlu1 %252, %v32_v8  }
   0x9   :  { %40 = vperm.xlu0 %251, %v30_v9  }
   0xb   :  { %241 = vmatpush3.bf16.msra.mxu0 %v255_v3 }
   0xc   :  { %242 = vmatprep.subr.bf16.mxu0 %v256_v7 }
   0xf   :  { %243 = vmatpush3.bf16.msra.mxu0 %v256_v7 }
  0x10   :  { %244 = vmatprep.subr.bf16.mxu0 %v257_v10 }
  0x13   :  { %245 = vmatpush3.bf16.msra.mxu0 %v257_v10 }
  0x16   :  { %247 = vmatmul.mubr.msk.bf16.vlgmr.msra.gmra.mrb[0].mxu0 %vm93_vm0, %v259_v11 }
  0x83   :  { %v46_v12 = vpop.permute.xlu1 %45 }
  0x84   :  { %v36_v13 = vpop.permute.xlu0 %35 }
  0x87   :  { %v51_v17 = vpop.permute.xlu1 %50 }
  0x88   :  { %v41_v20 = vpop.permute.xlu0 %40 }
  0xe9   :  { %v248_v14 = vpop.f32.mrb[0].mxu0 }
  0xea   :  { %v143_v15 = vadd.f32 %v248_v14, %v46_v12  ;;  %v134_v16 = vpop.f32.mrb[1].mxu0 }
  0xeb   :  { %v135_v18 = vadd.f32 %v134_v16, %v36_v13  ;;  %v249_v19 = vpop.f32.mrb[2].mxu0 }
  0xec   :  { %v151_v21 = vmin.f32 %v143_v15, 0.0  ;;  %v146_v22 = vadd.f32 %v249_v19, %v51_v17  ;;  %v137_v23 = vpop.f32.mrb[3].mxu0  ;;  %vm155_vm1 = vcmp.gt.f32.partialorder %v143_v15, 0.0 }
  0xed   :  { %v149_v24 = vmin.f32 %v135_v18, 0.0  ;;  %v138_v25 = vadd.f32 %v137_v23, %v41_v20  ;;  %vm153_vm3 = vcmp.gt.f32.partialorder %v135_v18, 0.0 }
  0xee   :  { %v161_v26 = vmul.f32 1.442695, %v151_v21  ;;  %v152_v27 = vmin.f32 %v146_v22, 0.0  ;;  %vm156_vm2 = vcmp.gt.f32.partialorder %v146_v22, 0.0 }
  0xef   :  { %v157_v28 = vmul.f32 1.442695, %v149_v24  ;;  %v150_v29 = vmin.f32 %v138_v25, 0.0  ;;  %vm154_vm4 = vcmp.gt.f32.partialorder %v138_v25, 0.0 }
  0xf0   :  { %260 = vpow2.f32 %v161_v26  ;;  %v163_v30 = vmul.f32 1.442695, %v152_v27 }
  0xf1   :  { %262 = vpow2.f32 %v157_v28  ;;  %v159_v31 = vmul.f32 1.442695, %v150_v29 }
  0xf2   :  { %264 = vpow2.f32 %v163_v30 }
  0xf3   :  { %266 = vpow2.f32 %v159_v31 }
  0xfa   :  { %v261_v32 = vpop.eup %260 }
  0xfb   :  { %v263_v33 = vpop.eup %262  ;;  %v208_v34 = vadd.f32 -1.0, %v261_v32 }
  0xfc   :  { %v265_v35 = vpop.eup %264  ;;  %v206_v36 = vadd.f32 -1.0, %v263_v33 }
  0xfd   :  { %v267_v37 = vpop.eup %266  ;;  %v209_v38 = vadd.f32 -1.0, %v265_v35  ;;  %v171_v40 = vsel %vm155_vm1, %v143_v15, %v208_v34 }
  0xfe   :  { %v207_v39 = vadd.f32 -1.0, %v267_v37  ;;  %v169_v42 = vsel %vm153_vm3, %v135_v18, %v206_v36 }
  0xff   :  { %v172_v41 = vsel %vm156_vm2, %v146_v22, %v209_v38 }
 0x100   :  { %v226_v43 = vpack.c.bf16 %v172_v41, %v171_v40  ;;  %v170_v44 = vsel %vm154_vm4, %v138_v25, %v207_v39 }
 0x101   :  { %v221_v45 = vpack.c.bf16 %v170_v44, %v169_v42 }
 0x102   :  { %228 = vst [vmem:[%s333_s3 + $0x8] sm:$0xff] %v226_v43  }
 0x103   :  { %222 = vst [vmem:[%s333_s3] sm:$0xff] %v221_v45  }

// kernel: forward.27
= control target key start
LH: loop header
LB: loop body
LE: loop exit
PB: predicated region body
PF: predicated region fallthrough
CT: control target
= control target key end

     0   :  { %v168_v0 = vmov 0.0   ;;  %vm169_vm0 = vmmov 0   ;;  %v170_v2 = vmov 0   ;;  %vm61_vm1 = vcmask 392192   ;;  %s220_s1 = inlined_call_operand.vmem [shape: bf16[48,128], index: 1, kind: input, shape index: {}]   ;;  %s221_s2 = inlined_call_operand.vmem [shape: f32[16,1], index: 2, kind: input, shape index: {}]   ;;  %s222_s0 = inlined_call_operand.vmem [shape: bf16[16,48], index: 0, kind: input, shape index: {}]   ;;  %s223_s3 = inlined_call_operand.vmem [shape: bf16[16,128], index: 3, kind: input, shape index: {}]   ;;  %s224_s4 = inlined_call_operand.vmem [shape: bf16[16,128], index: 4, kind: output, shape index: {}]  }
   0x1   :  { %150 = vmatprep.subr.bf16.mxu0 %v168_v0  ;;  %v164_v1 = vld [vmem:[%s220_s1] sm:$0xff]   ;;  %156 = vmatprep.mubr.msk.bf16.mxu0 %vm169_vm0, %v168_v0  ;;  %v165_v3 = vld [vmem:[%s220_s1 + $0x8] sm:$0xff]   ;;  %v166_v5 = vld [vmem:[%s220_s1 + $0x10] sm:$0xff]  }
   0x2   :  { %163 = vset.pattern.permute.xlu0 %v170_v2  ;;  %151 = vmatpush3.bf16.msra.mxu0 %v164_v1  ;;  %v26_v4 = vld [vmem:[%s221_s2] sm:$0xff]  ;;  %v27_v6 = vld [vmem:[%s221_s2 + $0x8] sm:$0xff] }
   0x3   :  { %152 = vmatprep.subr.bf16.mxu0 %v168_v0  ;;  %30 = vperm.xlu0 %163, %v26_v4   ;;  %v167_v7 = vld [vmem:[%s222_s0] sm:$0xff]  }
   0x4   :  { %v138_v9 = vld [vmem:[%s223_s3] sm:$0xff]  }
   0x5   :  { %v139_v10 = vunpack.c.l.bf16 %v138_v9  ;;  %v140_v14 = vunpack.c.h.bf16 %v138_v9 }
   0x6   :  { %153 = vmatpush3.bf16.msra.mxu0 %v165_v3 }
   0x7   :  { %154 = vmatprep.subr.bf16.mxu0 %v168_v0  ;;  %35 = vperm.xlu0 %163, %v27_v6  }
   0xa   :  { %155 = vmatpush3.bf16.msra.mxu0 %v166_v5 }
   0xd   :  { %157 = vmatmul.mubr.msk.bf16.vlgmr.msra.gmra.mrb[0].mxu0 %vm61_vm1, %v167_v7 }
  0x82   :  { %v31_v8 = vpop.permute.xlu0 %30 }
  0x86   :  { %v36_v15 = vpop.permute.xlu0 %35 }
  0xe0   :  { %v99_v11 = vpop.f32.mrb[0].mxu0 }
  0xe1   :  { %v100_v12 = vadd.f32 %v99_v11, %v31_v8  ;;  %v158_v13 = vpop.f32.mrb[1].mxu0 }
  0xe2   :  { %v102_v16 = vpop.f32.mrb[2].mxu0 }
  0xe3   :  { %v110_v17 = vadd.f32 %v139_v10, %v100_v12  ;;  %v103_v18 = vadd.f32 %v102_v16, %v36_v15  ;;  %v159_v19 = vpop.f32.mrb[3].mxu0 }
  0xe5   :  { %v111_v20 = vadd.f32 %v140_v14, %v103_v18  ;;  %v112_v21 = vmax.f32 %v110_v17, 0.0 }
  0xe7   :  { %v113_v22 = vmax.f32 %v111_v20, 0.0 }
  0xe9   :  { %v144_v23 = vpack.c.bf16 %v113_v22, %v112_v21 }
  0xeb   :  { %145 = vst [vmem:[%s224_s4] sm:$0xff] %v144_v23  }

// kernel: forward.26
= control target key start
LH: loop header
LB: loop body
LE: loop exit
PB: predicated region body
PF: predicated region fallthrough
CT: control target
= control target key end

     0   :  { %v171_v0 = vmov 0.0   ;;  %vm172_vm0 = vmmov 0   ;;  %v173_v2 = vmov 0   ;;  %vm58_vm1 = vcmask 392192   ;;  %s215_s1 = inlined_call_operand.vmem [shape: bf16[48,128], index: 1, kind: input, shape index: {}]   ;;  %s216_s2 = inlined_call_operand.vmem [shape: f32[16,1], index: 2, kind: input, shape index: {}]   ;;  %s217_s0 = inlined_call_operand.vmem [shape: bf16[16,48], index: 0, kind: input, shape index: {}]   ;;  %s218_s3 = inlined_call_operand.vmem [shape: bf16[16,128], index: 3, kind: output, shape index: {}]  }
   0x1   :  { %149 = vmatprep.subr.bf16.mxu0 %v171_v0  ;;  %v163_v1 = vld [vmem:[%s215_s1] sm:$0xff]   ;;  %155 = vmatprep.mubr.msk.bf16.mxu0 %vm172_vm0, %v171_v0  ;;  %v164_v3 = vld [vmem:[%s215_s1 + $0x8] sm:$0xff]   ;;  %v165_v5 = vld [vmem:[%s215_s1 + $0x10] sm:$0xff]  }
   0x2   :  { %162 = vset.pattern.permute.xlu0 %v173_v2  ;;  %150 = vmatpush3.bf16.msra.mxu0 %v163_v1  ;;  %v23_v4 = vld [vmem:[%s216_s2] sm:$0xff]  ;;  %v24_v6 = vld [vmem:[%s216_s2 + $0x8] sm:$0xff] }
   0x3   :  { %151 = vmatprep.subr.bf16.mxu0 %v171_v0  ;;  %27 = vperm.xlu0 %162, %v23_v4   ;;  %v166_v7 = vld [vmem:[%s217_s0] sm:$0xff]  }
   0x6   :  { %152 = vmatpush3.bf16.msra.mxu0 %v164_v3 }
   0x7   :  { %153 = vmatprep.subr.bf16.mxu0 %v171_v0  ;;  %32 = vperm.xlu0 %162, %v24_v6  }
   0xa   :  { %154 = vmatpush3.bf16.msra.mxu0 %v165_v5 }
   0xd   :  { %156 = vmatmul.mubr.msk.bf16.vlgmr.msra.gmra.mrb[0].mxu0 %vm58_vm1, %v166_v7 }
  0x82   :  { %v28_v8 = vpop.permute.xlu0 %27 }
  0x86   :  { %v33_v12 = vpop.permute.xlu0 %32 }
  0xe0   :  { %v96_v9 = vpop.f32.mrb[0].mxu0 }
  0xe1   :  { %v97_v10 = vadd.f32 %v96_v9, %v28_v8  ;;  %v157_v11 = vpop.f32.mrb[1].mxu0 }
  0xe2   :  { %v99_v13 = vpop.f32.mrb[2].mxu0 }
  0xe3   :  { %v103_v14 = vmin.f32 %v97_v10, 0.0  ;;  %v100_v15 = vadd.f32 %v99_v13, %v33_v12  ;;  %v158_v16 = vpop.f32.mrb[3].mxu0  ;;  %vm105_vm2 = vcmp.gt.f32.partialorder %v97_v10, 0.0 }
  0xe5   :  { %v107_v17 = vmul.f32 1.442695, %v103_v14  ;;  %v104_v18 = vmin.f32 %v100_v15, 0.0  ;;  %vm106_vm3 = vcmp.gt.f32.partialorder %v100_v15, 0.0 }
  0xe7   :  { %167 = vpow2.f32 %v107_v17  ;;  %v109_v19 = vmul.f32 1.442695, %v104_v18 }
  0xe9   :  { %169 = vpow2.f32 %v109_v19 }
  0xf1   :  { %v168_v20 = vpop.eup %167 }
  0xf2   :  { %v134_v21 = vadd.f32 -1.0, %v168_v20 }
  0xf3   :  { %v170_v22 = vpop.eup %169 }
  0xf4   :  { %v135_v23 = vadd.f32 -1.0, %v170_v22  ;;  %v113_v24 = vsel %vm105_vm2, %v97_v10, %v134_v21 }
  0xf6   :  { %v114_v25 = vsel %vm106_vm3, %v100_v15, %v135_v23 }
  0xf7   :  { %v143_v26 = vpack.c.bf16 %v114_v25, %v113_v24 }
  0xf9   :  { %144 = vst [vmem:[%s218_s3] sm:$0xff] %v143_v26  }

// kernel: forward.30
= control target key start
LH: loop header
LB: loop body
LE: loop exit
PB: predicated region body
PF: predicated region fallthrough
CT: control target
= control target key end

     0   :  { %s537_s12 = smov 0   ;;  %s539_s13 = smov 0   ;;  %s610_s0 = inlined_call_operand.vmem [shape: bf16[16,16], index: 0, kind: input, shape index: {}]   ;;  %s611_s1 = inlined_call_operand.vmem [shape: bf16[16,512], index: 1, kind: input, shape index: {}]   ;;  %s612_s2 = inlined_call_operand.vmem [shape: f32[16,1], index: 2, kind: input, shape index: {}]   ;;  %s613_s3 = inlined_call_operand.vmem [shape: bf16[16,512], index: 3, kind: output, shape index: {}]  }
   0x1   :  { %s541_s14 = smov 0  }
   0x2 LB: > { %s425_s15 = sadd.s32 4294967295, %s514_s14   ;;  %s554_s16 = sadd.s32 1, %s514_s14   ;;  %s514_s14 = sphi %s541_s14, %s617_s14   ;;  %s510_s13 = sphi %s539_s13, %s616_s13   ;;  %s506_s12 = sphi %s537_s12, %s615_s12  }
   0x3   : > { %s38_s17 = ssub.s32 %s514_s14, %s554_s16  ;;  %s41_s18 = sadd.s32 1, %s510_s13 }
   0x4   : > { %p39_p0 = scmp.eq.s32.totalorder %s38_s17, 0  ;;  %p48_p1 = scmp.ne.s32.totalorder %s510_s13, %s506_s12 }
   0x5   : > { %p49_p2 = scmp.eq.s32.totalorder %s514_s14, 0  ;;  %p99_p3 = scmp.eq.s32.totalorder %s425_s15, 1 }
   0x6   : > { %s565_s19 = scalar_select %p39_p0, %s510_s13, %s41_s18  }
   0x7   : > { %p50_p4 = por %p49_p2, %p48_p1  ;;  %p567_p5 = por %p99_p3, %p48_p1 }
   0x8   : > { %p428_p6 = scmp.ge.s32.totalorder %s514_s14, 2 }
   0xa   : > { %127 = sbr.rel (%p428_p6) target bundleno = 24 (0x18), region = 24 }
  0x11   : > { %130 = sbr.rel (!%p50_p4) target bundleno = 24 (0x18), region = 28  ;;  %s132_s21 = sand.u32 (%p50_p4), 1, %s510_s13  }
  0x12   : > { %s450_s22 = sshll.u32 (%p50_p4), %s514_s14, 3  ;;  %s429_s23 = sshll.u32 (%p50_p4), %s132_s21, 4 }
  0x13   : > { %s137_s26 = scalar_lea.vmem (%p50_p4), %s611_s1, %s450_s22  ;;  %s134_s27 = scalar_lea.vmem (%p50_p4), [#allocation2], %s429_s23 }
  0x14   : > { %v167_v0 = vld [vmem:[%s137_s26] sm:$0xff] (%p50_p4)  ;;  %v169_v1 = vld [vmem:[%s137_s26 + $0x10] sm:$0xff] (%p50_p4) }
  0x15   : > { %168 = vst [vmem:[%s134_s27] sm:$0xff] (%p50_p4), %v167_v0  ;;  %170 = vst [vmem:[%s134_s27 + $0x8] sm:$0xff] (%p50_p4), %v169_v1 }
  0x18 PF: > { %p432_p7 = scmp.ge.s32.totalorder %s514_s14, 1  ;;  %p175_p8 = scmp.lt.s32.totalorder %s514_s14, 3 }
  0x1a   : > { %p176_p9 = pnand %p432_p7, %p175_p8 }
  0x1b   : > { %s182_s28 = sand.u32 (!%p176_p9), 1, %s506_s12   ;;  %v516_v2 = vmov (!%p176_p9), 0   ;;  %v211_v3 = vld [vmem:[%s612_s2] sm:$0xff] (!%p176_p9)  ;;  %v212_v4 = vld [vmem:[%s612_s2 + $0x8] sm:$0xff] (!%p176_p9)  ;;  %vm238_vm0 = vcmask (!%p176_p9), 130048  }
  0x1c   : > { %179 = sbr.rel (%p176_p9) target bundleno = 281 (0x119), region = 66  ;;  %s580_s29 = sshll.u32 (!%p176_p9), %s182_s28, 4  ;;  %274 = vmatprep.mubr.bf16.mxu0 (!%p176_p9), %v516_v2  ;;  %479 = vset.pattern.permute.xlu0 (!%p176_p9), %v516_v2  ;;  %v483_v7 = vld [vmem:[%s610_s0] sm:$0xff] (!%p176_p9)  }
  0x1d   : > { %215 = vperm.xlu0 (!%p176_p9), %479, %v211_v3   ;;  %s184_s7 = scalar_lea.vmem (!%p176_p9), [#allocation2], %s580_s29  ;;  %s203_s10 = scalar_lea.vmem (!%p176_p9), [#allocation3], %s580_s29 }
  0x1e   : > { %v480_v5 = vld [vmem:[%s184_s7 + $0x4] ss:$8 sps:$4 sm:$0xff] (!%p176_p9)   ;;  %v482_v6 = vld [vmem:[%s184_s7] ss:$8 sps:$4 sm:$0xff] (!%p176_p9)  }
  0x1f   : > { %242 = vmatprep.subr.bf16.mxu0 (!%p176_p9), %v480_v5 }
  0x20   : > { %243 = vmatpush1.bf16.msra.mxu0 (!%p176_p9), %v482_v6 }
  0x21   : > { %220 = vperm.xlu0 (!%p176_p9), %479, %v212_v4  }
  0x23   : > { %438 = vmatmul.mubr.msk.bf16.vlgmr.msra.gmra.mrb[0].mxu0 %vm238_vm0, %v483_v7  ;;  %s453_s11 = sshll.u32 (%p567_p5), %s425_s15, 3 }
  0x24   : > { %s332_s18 = scalar_lea.vmem (%p567_p5), %s613_s3, %s453_s11 }
  0x9c   : > { %v216_v8 = vpop.permute.xlu0 %215 }
  0xa0   : > { %v221_v12 = vpop.permute.xlu0 %220 }
  0xf6   : > { %v276_v9 = vpop.f32.mrb[0].mxu0 }
  0xf7   : > { %v277_v10 = vadd.f32 %v276_v9, %v216_v8  ;;  %v278_v11 = vpop.f32.mrb[1].mxu0 }
  0xf8   : > { %v279_v13 = vadd.f32 %v278_v11, %v216_v8  ;;  %v280_v14 = vpop.f32.mrb[2].mxu0 }
  0xf9   : > { %v285_v15 = vmin.f32 %v277_v10, 0.0  ;;  %v281_v16 = vadd.f32 %v280_v14, %v221_v12  ;;  %v282_v17 = vpop.f32.mrb[3].mxu0  ;;  %vm289_vm1 = vcmp.gt.f32.partialorder %v277_v10, 0.0 }
  0xfa   : > { %v286_v18 = vmin.f32 %v279_v13, 0.0  ;;  %v283_v19 = vadd.f32 %v282_v17, %v221_v12  ;;  %vm290_vm2 = vcmp.gt.f32.partialorder %v279_v13, 0.0 }
  0xfb   : > { %v293_v20 = vmul.f32 1.442695, %v285_v15  ;;  %v287_v21 = vmin.f32 %v281_v16, 0.0  ;;  %vm291_vm3 = vcmp.gt.f32.partialorder %v281_v16, 0.0 }
  0xfc   : > { %v295_v22 = vmul.f32 1.442695, %v286_v18  ;;  %v288_v23 = vmin.f32 %v283_v19, 0.0  ;;  %vm292_vm4 = vcmp.gt.f32.partialorder %v283_v19, 0.0 }
  0xfd   : > { %484 = vpow2.f32 %v293_v20  ;;  %v297_v24 = vmul.f32 1.442695, %v287_v21 }
  0xfe   : > { %486 = vpow2.f32 %v295_v22  ;;  %v299_v25 = vmul.f32 1.442695, %v288_v23 }
  0xff   : > { %488 = vpow2.f32 %v297_v24 }
 0x100   : > { %490 = vpow2.f32 %v299_v25 }
 0x107   : > { %v485_v26 = vpop.eup %484 }
 0x108   : > { %v487_v27 = vpop.eup %486  ;;  %v439_v28 = vadd.f32 -1.0, %v485_v26 }
 0x109   : > { %v489_v29 = vpop.eup %488  ;;  %v440_v30 = vadd.f32 -1.0, %v487_v27 }
 0x10a   : > { %v491_v31 = vpop.eup %490  ;;  %v305_v32 = vsel %vm289_vm1, %v277_v10, %v439_v28  ;;  %v441_v33 = vadd.f32 -1.0, %v489_v29  ;;  %329 = sbr.rel (!%p567_p5) target bundleno = 281 (0x119), region = 74 }
 0x10b   : > { %v306_v34 = vsel %vm290_vm2, %v279_v13, %v440_v30  ;;  %v442_v35 = vadd.f32 -1.0, %v491_v31 }
 0x10c   : > { %v451_v36 = vpack.c.bf16 %v306_v34, %v305_v32  ;;  %v307_v37 = vsel %vm291_vm3, %v281_v16, %v441_v33 }
 0x10d   : > { %v308_v38 = vsel %vm292_vm4, %v283_v19, %v442_v35 }
 0x10e   : > { %321 = vst [vmem:[%s203_s10] sm:$0xff] %v451_v36  ;;  %v452_v39 = vpack.c.bf16 %v308_v38, %v307_v37 }
 0x110   : > { %322 = vst [vmem:[%s203_s10 + $0x8] sm:$0xff] %v452_v39 }
 0x115   : > { %v362_v40 = vld [vmem:[%s203_s10] sm:$0xff] }
 0x116   : > { %363 = vst [vmem:[%s332_s18] sm:$0xff] %v362_v40 }
 0x117   : > { %v364_v41 = vld [vmem:[%s203_s10 + $0x8] sm:$0xff] }
 0x118   : > { %365 = vst [vmem:[%s332_s18 + $0x10] sm:$0xff] %v364_v41 }
 0x119 PF: > { %p10_p10 = scmp.ge.s32.totalorder %s554_s16, 4   ;;  %s615_s12 = smov %s510_s13 }
 0x11a   : > { %s616_s13 = smov %s565_s19  ;;  %s617_s14 = smov %s554_s16 }
 0x11b   :  { %12 = sbr.rel (!%p10_p10) target bundleno = 2 (0x2), region = 143 }

// kernel: forward.31
= control target key start
LH: loop header
LB: loop body
LE: loop exit
PB: predicated region body
PF: predicated region fallthrough
CT: control target
= control target key end

     0   :  { %s630_s15 = smov 0   ;;  %s632_s16 = smov 0   ;;  %s717_s0 = inlined_call_operand.vmem [shape: bf16[16,16], index: 0, kind: input, shape index: {}]   ;;  %s718_s1 = inlined_call_operand.vmem [shape: bf16[16,512], index: 1, kind: input, shape index: {}]   ;;  %s719_s2 = inlined_call_operand.vmem [shape: f32[16,1], index: 2, kind: input, shape index: {}]   ;;  %s720_s3 = inlined_call_operand.vmem [shape: bf16[16,512], index: 3, kind: input, shape index: {}]   ;;  %s721_s4 = inlined_call_operand.vmem [shape: bf16[16,512], index: 4, kind: output, shape index: {}]  }
   0x1   :  { %s634_s17 = smov 0  }
   0x2 LB: > { %s520_s18 = sadd.s32 4294967295, %s602_s17   ;;  %s647_s19 = sadd.s32 1, %s602_s17   ;;  %s602_s17 = sphi %s634_s17, %s726_s17   ;;  %s598_s16 = sphi %s632_s16, %s725_s16   ;;  %s594_s15 = sphi %s630_s15, %s724_s15  }
   0x3   : > { %s39_s20 = ssub.s32 %s602_s17, %s647_s19  ;;  %s42_s21 = sadd.s32 1, %s598_s16 }
   0x4   : > { %p40_p0 = scmp.eq.s32.totalorder %s39_s20, 0  ;;  %p49_p1 = scmp.ne.s32.totalorder %s598_s16, %s594_s15 }
   0x5   : > { %p50_p2 = scmp.eq.s32.totalorder %s602_s17, 0  ;;  %p126_p3 = scmp.eq.s32.totalorder %s520_s18, 1 }
   0x6   : > { %s658_s22 = scalar_select %p40_p0, %s598_s16, %s42_s21  }
   0x7   : > { %p660_p4 = por %p50_p2, %p49_p1  ;;  %p664_p5 = por %p126_p3, %p49_p1 }
   0x8   : > { %p523_p6 = scmp.ge.s32.totalorder %s602_s17, 2 }
   0xa   : > { %154 = sbr.rel (%p523_p6) target bundleno = 31 (0x1f), region = 24 }
  0x11   : > { %157 = sbr.rel (!%p660_p4) target bundleno = 24 (0x18), region = 28  ;;  %s159_s25 = sand.u32 (%p660_p4), 1, %s598_s16  }
  0x12   : > { %s545_s26 = sshll.u32 (%p660_p4), %s602_s17, 3  ;;  %s524_s27 = sshll.u32 (%p660_p4), %s159_s25, 4 }
  0x13   : > { %s164_s30 = scalar_lea.vmem (%p660_p4), %s718_s1, %s545_s26  ;;  %s161_s5 = scalar_lea.vmem (%p660_p4), [#allocation2], %s524_s27 }
  0x14   : > { %v194_v0 = vld [vmem:[%s164_s30] sm:$0xff] (%p660_p4)  ;;  %v196_v1 = vld [vmem:[%s164_s30 + $0x10] sm:$0xff] (%p660_p4) }
  0x15   : > { %195 = vst [vmem:[%s161_s5] sm:$0xff] (%p660_p4), %v194_v0  ;;  %197 = vst [vmem:[%s161_s5 + $0x8] sm:$0xff] (%p660_p4), %v196_v1 }
  0x18 PF: > { %203 = sbr.rel (!%p660_p4) target bundleno = 31 (0x1f), region = 66  ;;  %s205_s6 = sand.u32 (%p660_p4), 1, %s598_s16  }
  0x19   : > { %s546_s7 = sshll.u32 (%p660_p4), %s602_s17, 3  ;;  %s527_s8 = sshll.u32 (%p660_p4), %s205_s6, 4 }
  0x1a   : > { %s210_s11 = scalar_lea.vmem (%p660_p4), %s720_s3, %s546_s7  ;;  %s207_s12 = scalar_lea.vmem (%p660_p4), [#allocation3], %s527_s8 }
  0x1b   : > { %v240_v2 = vld [vmem:[%s210_s11] sm:$0xff] (%p660_p4)  ;;  %v242_v3 = vld [vmem:[%s210_s11 + $0x10] sm:$0xff] (%p660_p4) }
  0x1c   : > { %241 = vst [vmem:[%s207_s12] sm:$0xff] (%p660_p4), %v240_v2  ;;  %243 = vst [vmem:[%s207_s12 + $0x8] sm:$0xff] (%p660_p4), %v242_v3 }
  0x1f PF: > { %p530_p7 = scmp.ge.s32.totalorder %s602_s17, 1  ;;  %p248_p8 = scmp.lt.s32.totalorder %s602_s17, 3 }
  0x21   : > { %p249_p9 = pnand %p530_p7, %p248_p8 }
  0x22   : > { %s255_s13 = sand.u32 (!%p249_p9), 1, %s594_s15   ;;  %v604_v4 = vmov (!%p249_p9), 0   ;;  %v298_v5 = vld [vmem:[%s719_s2] sm:$0xff] (!%p249_p9)  ;;  %v299_v6 = vld [vmem:[%s719_s2 + $0x8] sm:$0xff] (!%p249_p9)  ;;  %vm325_vm0 = vcmask (!%p249_p9), 130048  }
  0x23   : > { %252 = sbr.rel (%p249_p9) target bundleno = 274 (0x112), region = 104  ;;  %s686_s14 = sshll.u32 (!%p249_p9), %s255_s13, 4  ;;  %361 = vmatprep.mubr.bf16.mxu0 (!%p249_p9), %v604_v4  ;;  %575 = vset.pattern.permute.xlu0 (!%p249_p9), %v604_v4  ;;  %v579_v9 = vld [vmem:[%s717_s0] sm:$0xff] (!%p249_p9)  }
  0x24   : > { %302 = vperm.xlu0 (!%p249_p9), %575, %v298_v5   ;;  %s257_s26 = scalar_lea.vmem (!%p249_p9), [#allocation2], %s686_s14  ;;  %s264_s28 = scalar_lea.vmem (!%p249_p9), [#allocation3], %s686_s14 }
  0x25   : > { %v576_v7 = vld [vmem:[%s257_s26 + $0x4] ss:$8 sps:$4 sm:$0xff] (!%p249_p9)   ;;  %v578_v8 = vld [vmem:[%s257_s26] ss:$8 sps:$4 sm:$0xff] (!%p249_p9)   ;;  %s289_s29 = scalar_lea.vmem (!%p249_p9), [#allocation4], %s686_s14 }
  0x26   : > { %329 = vmatprep.subr.bf16.mxu0 (!%p249_p9), %v576_v7  ;;  %v372_v11 = vld [vmem:[%s264_s28] sm:$0xff] (!%p249_p9)  ;;  %v373_v12 = vld [vmem:[%s264_s28 + $0x8] sm:$0xff] (!%p249_p9) }
  0x27   : > { %330 = vmatpush1.bf16.msra.mxu0 (!%p249_p9), %v578_v8  ;;  %v374_v13 = vunpack.c.l.bf16 (!%p249_p9), %v372_v11  ;;  %v375_v15 = vunpack.c.h.bf16 (!%p249_p9), %v372_v11  ;;  %v376_v18 = vunpack.c.l.bf16 (!%p249_p9), %v373_v12  ;;  %v377_v22 = vunpack.c.h.bf16 (!%p249_p9), %v373_v12 }
  0x28   : > { %307 = vperm.xlu0 (!%p249_p9), %575, %v299_v6  }
  0x2a   : > { %537 = vmatmul.mubr.msk.bf16.vlgmr.msra.gmra.mrb[0].mxu0 %vm325_vm0, %v579_v9  ;;  %s549_s30 = sshll.u32 (%p664_p5), %s520_s18, 3 }
  0x2b   : > { %s409_s7 = scalar_lea.vmem (%p664_p5), %s721_s4, %s549_s30 }
  0xa3   : > { %v303_v10 = vpop.permute.xlu0 %302 }
  0xa7   : > { %v308_v19 = vpop.permute.xlu0 %307 }
  0xfd   : > { %v363_v14 = vpop.f32.mrb[0].mxu0 }
  0xfe   : > { %v364_v16 = vadd.f32 %v363_v14, %v303_v10  ;;  %v365_v17 = vpop.f32.mrb[1].mxu0 }
  0xff   : > { %v366_v20 = vadd.f32 %v365_v17, %v303_v10  ;;  %v367_v21 = vpop.f32.mrb[2].mxu0 }
 0x100   : > { %v378_v23 = vadd.f32 %v374_v13, %v364_v16  ;;  %v368_v24 = vadd.f32 %v367_v21, %v308_v19  ;;  %v369_v25 = vpop.f32.mrb[3].mxu0 }
 0x101   : > { %v379_v26 = vadd.f32 %v375_v15, %v366_v20  ;;  %v370_v27 = vadd.f32 %v369_v25, %v308_v19 }
 0x102   : > { %v382_v28 = vmax.f32 %v378_v23, 0.0  ;;  %v380_v29 = vadd.f32 %v376_v18, %v368_v24 }
 0x103   : > { %v383_v30 = vmax.f32 %v379_v26, 0.0  ;;  %v381_v31 = vadd.f32 %v377_v22, %v370_v27  ;;  %406 = sbr.rel (!%p664_p5) target bundleno = 274 (0x112), region = 116 }
 0x104   : > { %v384_v32 = vmax.f32 %v380_v29, 0.0 }
 0x105   : > { %v547_v33 = vpack.c.bf16 %v383_v30, %v382_v28  ;;  %v385_v34 = vmax.f32 %v381_v31, 0.0 }
 0x107   : > { %398 = vst [vmem:[%s289_s29] sm:$0xff] %v547_v33  ;;  %v548_v35 = vpack.c.bf16 %v385_v34, %v384_v32 }
 0x109   : > { %399 = vst [vmem:[%s289_s29 + $0x8] sm:$0xff] %v548_v35 }
 0x10e   : > { %v439_v36 = vld [vmem:[%s289_s29] sm:$0xff] }
 0x10f   : > { %440 = vst [vmem:[%s409_s7] sm:$0xff] %v439_v36 }
 0x110   : > { %v441_v37 = vld [vmem:[%s289_s29 + $0x8] sm:$0xff] }
 0x111   : > { %442 = vst [vmem:[%s409_s7 + $0x10] sm:$0xff] %v441_v37 }
 0x112 PF: > { %p11_p10 = scmp.ge.s32.totalorder %s647_s19, 4   ;;  %s724_s15 = smov %s598_s16 }
 0x113   : > { %s725_s16 = smov %s658_s22  ;;  %s726_s17 = smov %s647_s19 }
 0x114   :  { %13 = sbr.rel (!%p11_p10) target bundleno = 2 (0x2), region = 193 }

</bundles_post_ra>
